<compile_context>
chip_gen: v6e
topology: v6e:2x2x1
jax: 0.10.0
libtpu: 0.0.40
codegen_flags: <defaults>
</compile_context>

<pallas_src>
import functools

import jax
import jax.numpy as jnp
from jax.experimental import pallas as pl
from jax.experimental.pallas import tpu as pltpu


def _round_up(x, m):
    return ((x + m - 1) // m) * m


def recall_booster_kernel(
    x_ref,
    w0_ref, b0_ref,
    w1_ref, b1_ref,
    w2_ref, b2_ref,
    w3_ref, b3_ref,
    o_ref,
    *,
    bf16_activations: bool,
):
    def leaky(z_f32):
        # maximum-form LeakyReLU(0.2): 2 VALU ops instead of 3 for where().
        if bf16_activations:
            # v6e/v7x: bf16 VPU -> each VALU op covers a 2048-element vreg and the
            # result is already in the dtype the next MXU push consumes.
            h = z_f32.astype(jnp.bfloat16)
        else:
            # v5e: no bf16 VPU; keep elementwise math in f32, cast at the dot edge.
            h = z_f32
        return jnp.maximum(h, 0.2 * h).astype(jnp.bfloat16)

    h = x_ref[...]  # already bf16 + zero-padded in the wrapper

    # hidden0: Linear(inp, 256) + LeakyReLU(0.2)
    z = jnp.dot(h, w0_ref[...], preferred_element_type=jnp.float32) + b0_ref[...]
    h = leaky(z)

    # hidden1: Linear(256, 512) + LeakyReLU(0.2)
    z = jnp.dot(h, w1_ref[...], preferred_element_type=jnp.float32) + b1_ref[...]
    h = leaky(z)

    # hidden2: Linear(512, 1024) + LeakyReLU(0.2) + Dropout(0.3)
    z = jnp.dot(h, w2_ref[...], preferred_element_type=jnp.float32) + b2_ref[...]
    h = leaky(z)
    # TODO(synk): training-mode Dropout(0.3) would use pltpu.prng_seed +
    # pltpu.prng_random_bits with inverted 1/0.7 scaling; eval() is identity.

    # out: Linear(1024, outDim) + Sigmoid.  exp rides the EUP slot; the divide is
    # moved onto the EUP too via pl.reciprocal instead of a VALU 1/x.
    z = jnp.dot(h, w3_ref[...], preferred_element_type=jnp.float32) + b3_ref[...]
    o_ref[...] = pl.reciprocal(1.0 + jnp.exp(-z), approx=True).astype(o_ref.dtype)


def recall_booster_forward(
    x,
    params,
    *,
    batch_tile=512,
    bf16_activations=True,
    out_dtype=jnp.float32,
):
    """x: (B, inputDim); params: dict of f32 (w0,b0,...,w3,b3) in (in,out)/(1,out) layout.

    batch_tile: per-generation knob -- 256-512 on v5e, 512-1024 on v6e/v7x (cap or
    set vmem_limit_bytes explicitly beyond ~2048 on v7x's 64 MiB VMEM).
    bf16_activations: True on v6e/v7x (bf16 VPU), False on v5e.
    """
    B, D_in = x.shape
    H0, H1, H2 = 256, 512, 1024
    D_out = params["w3"].shape[1]

    # Layout guard: weights must already be (in, out) (i.e. transposed vs PyTorch
    # nn.Linear's (out, in)) and biases (1, out).
    assert params["w0"].shape == (D_in, H0) and params["b0"].shape == (1, H0)
    assert params["w1"].shape == (H0, H1) and params["b1"].shape == (1, H1)
    assert params["w2"].shape == (H1, H2) and params["b2"].shape == (1, H2)
    assert params["w3"].shape == (H2, D_out) and params["b3"].shape == (1, D_out)

    # Lane-dense feature dims (multiples of 128) -> unmasked full-lane loads/stores.
    D_in_p = _round_up(D_in, 128)
    D_out_p = _round_up(D_out, 128)

    # Batch tiling: a batch that fits in one tile runs as ONE grid step (never
    # split a small batch into tiny M=8 MXU pushes); larger batches are split
    # into balanced ~batch_tile-row tiles.
    B8 = _round_up(B, 8)
    if B8 <= batch_tile:
        tile = B8
    else:
        n_steps = pl.cdiv(B8, batch_tile)
        tile = _round_up(pl.cdiv(B8, n_steps), 8)
    B_pad = _round_up(B, tile)
    grid = (B_pad // tile,)

    # Input in bf16 (halves x DMA; the MXU consumes bf16 either way), zero-padded.
    x_p = x.astype(jnp.bfloat16)
    if (B_pad, D_in_p) != (B, D_in):
        x_p = jnp.pad(x_p, ((0, B_pad - B), (0, D_in_p - D_in)))

    def _pad_to(a, shape, dtype):
        a = a.astype(dtype)
        pads = [(0, s - d) for s, d in zip(shape, a.shape)]
        if any(p[1] for p in pads):
            a = jnp.pad(a, pads)
        return a

    # Weights bf16 (native MXU path), biases f32; pad w0 rows / w3 cols / b3.
    w0 = _pad_to(params["w0"], (D_in_p, H0), jnp.bfloat16)
    b0 = params["b0"].astype(jnp.float32)
    w1 = params["w1"].astype(jnp.bfloat16)
    b1 = params["b1"].astype(jnp.float32)
    w2 = params["w2"].astype(jnp.bfloat16)
    b2 = params["b2"].astype(jnp.float32)
    w3 = _pad_to(params["w3"], (H2, D_out_p), jnp.bfloat16)
    b3 = _pad_to(params["b3"], (1, D_out_p), jnp.float32)

    def const_spec(a):
        # Whole parameter resident in VMEM; constant block index => fetched once,
        # never re-DMA'd across grid steps.  ~1.6 MiB bf16 total (<=3.2 MiB
        # double-buffered) -- far under scoped VMEM on every generation, so
        # pl.Buffered(1) single-buffering is not needed here.
        return pl.BlockSpec(a.shape, lambda i: (0,) * a.ndim)

    in_specs = [
        pl.BlockSpec((tile, D_in_p), lambda i: (i, 0)),
        const_spec(w0), const_spec(b0),
        const_spec(w1), const_spec(b1),
        const_spec(w2), const_spec(b2),
        const_spec(w3), const_spec(b3),
    ]
    out_specs = pl.BlockSpec((tile, D_out_p), lambda i: (i, 0))

    out_itemsize = jnp.dtype(out_dtype).itemsize
    flops = 2 * B_pad * (D_in_p * H0 + H0 * H1 + H1 * H2 + H2 * D_out_p)
    bytes_accessed = (
        x_p.size * 2
        + (w0.size + w1.size + w2.size + w3.size) * 2
        + (b0.size + b1.size + b2.size + b3.size) * 4
        + B_pad * D_out_p * out_itemsize
    )
    cost = pl.CostEstimate(
        flops=flops,
        transcendentals=2 * B_pad * D_out_p,  # sigmoid exp + EUP reciprocal
        bytes_accessed=bytes_accessed,
    )

    kernel = functools.partial(
        recall_booster_kernel, bf16_activations=bf16_activations
    )

    out = pl.pallas_call(
        kernel,
        out_shape=jax.ShapeDtypeStruct((B_pad, D_out_p), out_dtype),
        grid_spec=pltpu.PrefetchScalarGridSpec(
            num_scalar_prefetch=0,
            grid=grid,
            in_specs=in_specs,
            out_specs=out_specs,
        ),
        compiler_params=pltpu.CompilerParams(
            dimension_semantics=("parallel",),
        ),
        cost_estimate=cost,
    )(x_p, w0, b0, w1, b1, w2, b2, w3, b3)

    return out[:B, :D_out]


def init_params(key, input_dim):
    """Deterministic init mimicking PyTorch Linear default (U(-1/sqrt(fan_in), +))."""
    dims = [(input_dim, 256), (256, 512), (512, 1024), (1024, input_dim)]
    params = {}
    for idx, (fan_in, fan_out) in enumerate(dims):
        key, kw, kb = jax.random.split(key, 3)
        bound = 1.0 / jnp.sqrt(fan_in)
        params[f"w{idx}"] = jax.random.uniform(
            kw, (fan_in, fan_out), jnp.float32, -bound, bound
        )
        params[f"b{idx}"] = jax.random.uniform(
            kb, (1, fan_out), jnp.float32, -bound, bound
        )
    return params


def reference_forward(x, params, bf16_activations=True):
    """Pure-JAX reference mirroring the kernel's bf16-weight / f32-accum numerics."""

    def lin(h, w, b):
        return jnp.dot(h.astype(jnp.bfloat16), w.astype(jnp.bfloat16),
                       preferred_element_type=jnp.float32) + b

    def act(z):
        h = z.astype(jnp.bfloat16) if bf16_activations else z
        return jnp.maximum(h, 0.2 * h)

    h = act(lin(x, params["w0"], params["b0"]))
    h = act(lin(h, params["w1"], params["b1"]))
    h = act(lin(h, params["w2"], params["b2"]))
    z = lin(h, params["w3"], params["b3"])
    return 1.0 / (1.0 + jnp.exp(-z))


if __name__ == "__main__":
    key = jax.random.PRNGKey(0)
    input_dim = 32   # RecallBooster(inputDim=32, numSamples=...)
    batch = 16

    key, kx, kp = jax.random.split(key, 3)
    x = jax.random.normal(kx, (batch, input_dim), jnp.float32)
    params = init_params(kp, input_dim)

    out = recall_booster_forward(x, params)
    out = jax.block_until_ready(out)

    ref = reference_forward(x, params)
    assert out.shape == (batch, input_dim)
    max_err = jnp.max(jnp.abs(out - ref))
    assert jnp.allclose(out, ref, atol=5e-3, rtol=5e-3), (
        f"mismatch vs JAX reference (max abs err {max_err})"
    )

    print("KERNEL_OK")
</pallas_src>

<mosaic_0001>
module attributes {stable_mosaic.version = 11 : i64} {
  func.func @recall_booster_kernel(%arg0: i32, %arg1: memref<16x128xbf16, #tpu.memory_space<vmem>>, %arg2: memref<128x256xbf16, #tpu.memory_space<vmem>>, %arg3: memref<1x256xf32, #tpu.memory_space<vmem>>, %arg4: memref<256x512xbf16, #tpu.memory_space<vmem>>, %arg5: memref<1x512xf32, #tpu.memory_space<vmem>>, %arg6: memref<512x1024xbf16, #tpu.memory_space<vmem>>, %arg7: memref<1x1024xf32, #tpu.memory_space<vmem>>, %arg8: memref<1024x128xbf16, #tpu.memory_space<vmem>>, %arg9: memref<1x128xf32, #tpu.memory_space<vmem>>, %arg10: memref<16x128xf32, #tpu.memory_space<vmem>>) attributes {dimension_semantics = [#tpu.dimension_semantics<parallel>], iteration_bounds = array<i64: 1>, scalar_prefetch = 0 : i64, scratch_operands = 0 : i64, tpu.core_type = #tpu.core_type<tc>, window_params = [{transform_indices = @transform_0, window_bounds = array<i64: 16, 128>}, {pipeline_mode = #tpu.pipeline_mode<synchronous>, transform_indices = @transform_1, window_bounds = array<i64: 128, 256>}, {pipeline_mode = #tpu.pipeline_mode<synchronous>, transform_indices = @transform_2, window_bounds = array<i64: 1, 256>}, {pipeline_mode = #tpu.pipeline_mode<synchronous>, transform_indices = @transform_3, window_bounds = array<i64: 256, 512>}, {pipeline_mode = #tpu.pipeline_mode<synchronous>, transform_indices = @transform_4, window_bounds = array<i64: 1, 512>}, {pipeline_mode = #tpu.pipeline_mode<synchronous>, transform_indices = @transform_5, window_bounds = array<i64: 512, 1024>}, {pipeline_mode = #tpu.pipeline_mode<synchronous>, transform_indices = @transform_6, window_bounds = array<i64: 1, 1024>}, {pipeline_mode = #tpu.pipeline_mode<synchronous>, transform_indices = @transform_7, window_bounds = array<i64: 1024, 128>}, {pipeline_mode = #tpu.pipeline_mode<synchronous>, transform_indices = @transform_8, window_bounds = array<i64: 1, 128>}, {transform_indices = @transform_9, window_bounds = array<i64: 16, 128>}]} {
    %c0 = arith.constant 0 : index
    %c0_0 = arith.constant 0 : index
    %0 = vector.load %arg1[%c0, %c0_0] : memref<16x128xbf16, #tpu.memory_space<vmem>>, vector<16x128xbf16>
    %c0_1 = arith.constant 0 : index
    %c0_2 = arith.constant 0 : index
    %1 = vector.load %arg2[%c0_1, %c0_2] : memref<128x256xbf16, #tpu.memory_space<vmem>>, vector<128x256xbf16>
    %cst = arith.constant dense<0.000000e+00> : vector<16x256xf32>
    %2 = tpu.matmul %0, %1, %cst {dimension_numbers = #tpu.dot_dimension_numbers<[1], [0], [0], [1], [0, 0, 1, 1], [], []>} : vector<16x128xbf16>, vector<128x256xbf16>, vector<16x256xf32> -> vector<16x256xf32>
    %c0_3 = arith.constant 0 : index
    %c0_4 = arith.constant 0 : index
    %3 = vector.load %arg3[%c0_3, %c0_4] : memref<1x256xf32, #tpu.memory_space<vmem>>, vector<1x256xf32>
    %4 = vector.broadcast %3 : vector<1x256xf32> to vector<16x256xf32>
    %5 = arith.addf %2, %4 : vector<16x256xf32>
    %6 = arith.truncf %5 : vector<16x256xf32> to vector<16x256xbf16>
    %cst_5 = arith.constant 2.001950e-01 : bf16
    %7 = vector.broadcast %cst_5 : bf16 to vector<16x256xbf16>
    %8 = arith.mulf %7, %6 : vector<16x256xbf16>
    %9 = arith.maximumf %6, %8 : vector<16x256xbf16>
    %c0_6 = arith.constant 0 : index
    %c0_7 = arith.constant 0 : index
    %10 = vector.load %arg4[%c0_6, %c0_7] : memref<256x512xbf16, #tpu.memory_space<vmem>>, vector<256x512xbf16>
    %cst_8 = arith.constant dense<0.000000e+00> : vector<16x512xf32>
    %11 = tpu.matmul %9, %10, %cst_8 {dimension_numbers = #tpu.dot_dimension_numbers<[1], [0], [0], [1], [0, 0, 1, 1], [], []>} : vector<16x256xbf16>, vector<256x512xbf16>, vector<16x512xf32> -> vector<16x512xf32>
    %c0_9 = arith.constant 0 : index
    %c0_10 = arith.constant 0 : index
    %12 = vector.load %arg5[%c0_9, %c0_10] : memref<1x512xf32, #tpu.memory_space<vmem>>, vector<1x512xf32>
    %13 = vector.broadcast %12 : vector<1x512xf32> to vector<16x512xf32>
    %14 = arith.addf %11, %13 : vector<16x512xf32>
    %15 = arith.truncf %14 : vector<16x512xf32> to vector<16x512xbf16>
    %cst_11 = arith.constant 2.001950e-01 : bf16
    %16 = vector.broadcast %cst_11 : bf16 to vector<16x512xbf16>
    %17 = arith.mulf %16, %15 : vector<16x512xbf16>
    %18 = arith.maximumf %15, %17 : vector<16x512xbf16>
    %c0_12 = arith.constant 0 : index
    %c0_13 = arith.constant 0 : index
    %19 = vector.load %arg6[%c0_12, %c0_13] : memref<512x1024xbf16, #tpu.memory_space<vmem>>, vector<512x1024xbf16>
    %cst_14 = arith.constant dense<0.000000e+00> : vector<16x1024xf32>
    %20 = tpu.matmul %18, %19, %cst_14 {dimension_numbers = #tpu.dot_dimension_numbers<[1], [0], [0], [1], [0, 0, 1, 1], [], []>} : vector<16x512xbf16>, vector<512x1024xbf16>, vector<16x1024xf32> -> vector<16x1024xf32>
    %c0_15 = arith.constant 0 : index
    %c0_16 = arith.constant 0 : index
    %21 = vector.load %arg7[%c0_15, %c0_16] : memref<1x1024xf32, #tpu.memory_space<vmem>>, vector<1x1024xf32>
    %22 = vector.broadcast %21 : vector<1x1024xf32> to vector<16x1024xf32>
    %23 = arith.addf %20, %22 : vector<16x1024xf32>
    %24 = arith.truncf %23 : vector<16x1024xf32> to vector<16x1024xbf16>
    %cst_17 = arith.constant 2.001950e-01 : bf16
    %25 = vector.broadcast %cst_17 : bf16 to vector<16x1024xbf16>
    %26 = arith.mulf %25, %24 : vector<16x1024xbf16>
    %27 = arith.maximumf %24, %26 : vector<16x1024xbf16>
    %c0_18 = arith.constant 0 : index
    %c0_19 = arith.constant 0 : index
    %28 = vector.load %arg8[%c0_18, %c0_19] : memref<1024x128xbf16, #tpu.memory_space<vmem>>, vector<1024x128xbf16>
    %cst_20 = arith.constant dense<0.000000e+00> : vector<16x128xf32>
    %29 = tpu.matmul %27, %28, %cst_20 {dimension_numbers = #tpu.dot_dimension_numbers<[1], [0], [0], [1], [0, 0, 1, 1], [], []>} : vector<16x1024xbf16>, vector<1024x128xbf16>, vector<16x128xf32> -> vector<16x128xf32>
    %c0_21 = arith.constant 0 : index
    %c0_22 = arith.constant 0 : index
    %30 = vector.load %arg9[%c0_21, %c0_22] : memref<1x128xf32, #tpu.memory_space<vmem>>, vector<1x128xf32>
    %31 = vector.broadcast %30 : vector<1x128xf32> to vector<16x128xf32>
    %32 = arith.addf %29, %31 : vector<16x128xf32>
    %cst_23 = arith.constant 0.000000e+00 : f32
    %33 = vector.broadcast %cst_23 : f32 to vector<16x128xf32>
    %34 = arith.subf %33, %32 : vector<16x128xf32>
    %35 = math.exp %34 : vector<16x128xf32>
    %cst_24 = arith.constant 1.000000e+00 : f32
    %36 = vector.broadcast %cst_24 : f32 to vector<16x128xf32>
    %37 = arith.addf %36, %35 : vector<16x128xf32>
    %38 = tpu.reciprocal %37 {approx = true} : vector<16x128xf32> -> vector<16x128xf32>
    %c0_25 = arith.constant 0 : index
    %c0_26 = arith.constant 0 : index
    %39 = vector.load %arg10[%c0_25, %c0_26] : memref<16x128xf32, #tpu.memory_space<vmem>>, vector<16x128xf32>
    tpu.vector_store %arg10[%c0_25, %c0_26], %38 {strides = array<i32>} : memref<16x128xf32, #tpu.memory_space<vmem>>, vector<16x128xf32>,
    return
  }
  func.func @transform_0(%arg0: i32) -> (i32, i32) {
    %c0_i32 = arith.constant 0 : i32
    %c0_i32_0 = arith.constant 0 : i32
    return %arg0, %c0_i32 : i32, i32
  }
  func.func @transform_1(%arg0: i32) -> (i32, i32) {
    %c0_i32 = arith.constant 0 : i32
    %c0_i32_0 = arith.constant 0 : i32
    %c0_i32_1 = arith.constant 0 : i32
    return %c0_i32, %c0_i32_0 : i32, i32
  }
  func.func @transform_2(%arg0: i32) -> (i32, i32) {
    %c0_i32 = arith.constant 0 : i32
    %c0_i32_0 = arith.constant 0 : i32
    %c0_i32_1 = arith.constant 0 : i32
    return %c0_i32, %c0_i32_0 : i32, i32
  }
  func.func @transform_3(%arg0: i32) -> (i32, i32) {
    %c0_i32 = arith.constant 0 : i32
    %c0_i32_0 = arith.constant 0 : i32
    %c0_i32_1 = arith.constant 0 : i32
    return %c0_i32, %c0_i32_0 : i32, i32
  }
  func.func @transform_4(%arg0: i32) -> (i32, i32) {
    %c0_i32 = arith.constant 0 : i32
    %c0_i32_0 = arith.constant 0 : i32
    %c0_i32_1 = arith.constant 0 : i32
    return %c0_i32, %c0_i32_0 : i32, i32
  }
  func.func @transform_5(%arg0: i32) -> (i32, i32) {
    %c0_i32 = arith.constant 0 : i32
    %c0_i32_0 = arith.constant 0 : i32
    %c0_i32_1 = arith.constant 0 : i32
    return %c0_i32, %c0_i32_0 : i32, i32
  }
  func.func @transform_6(%arg0: i32) -> (i32, i32) {
    %c0_i32 = arith.constant 0 : i32
    %c0_i32_0 = arith.constant 0 : i32
    %c0_i32_1 = arith.constant 0 : i32
    return %c0_i32, %c0_i32_0 : i32, i32
  }
  func.func @transform_7(%arg0: i32) -> (i32, i32) {
    %c0_i32 = arith.constant 0 : i32
    %c0_i32_0 = arith.constant 0 : i32
    %c0_i32_1 = arith.constant 0 : i32
    return %c0_i32, %c0_i32_0 : i32, i32
  }
  func.func @transform_8(%arg0: i32) -> (i32, i32) {
    %c0_i32 = arith.constant 0 : i32
    %c0_i32_0 = arith.constant 0 : i32
    %c0_i32_1 = arith.constant 0 : i32
    return %c0_i32, %c0_i32_0 : i32, i32
  }
  func.func @transform_9(%arg0: i32) -> (i32, i32) {
    %c0_i32 = arith.constant 0 : i32
    %c0_i32_0 = arith.constant 0 : i32
    return %arg0, %c0_i32 : i32, i32
  }
}

</mosaic_0001>

<bundles_post_ra>
// kernel: tpu_custom_call.1
= control target key start
LH: loop header
LB: loop body
LE: loop exit
PB: predicated region body
PF: predicated region fallthrough
CT: control target
= control target key end

     0   :  { %14 = vsyncpa [#allocation3], 0  ;;  %s4464_s0 = inlined_call_operand.hbm [shape: bf16[16,128], index: 0, kind: input, shape index: {}]   ;;  %s4465_s1 = inlined_call_operand.hbm [shape: bf16[128,256], index: 1, kind: input, shape index: {}]   ;;  %s4466_s2 = inlined_call_operand.vmem [shape: f32[1,256], index: 2, kind: input, shape index: {}]   ;;  %s4467_s3 = inlined_call_operand.hbm [shape: bf16[256,512], index: 3, kind: input, shape index: {}]   ;;  %s4468_s4 = inlined_call_operand.hbm [shape: f32[1,512], index: 4, kind: input, shape index: {}]   ;;  %s4469_s5 = inlined_call_operand.hbm [shape: bf16[512,1024], index: 5, kind: input, shape index: {}]   ;;  %s4470_s6 = inlined_call_operand.vmem [shape: f32[1,1024], index: 6, kind: input, shape index: {}]   ;;  %s4471_s7 = inlined_call_operand.hbm [shape: bf16[1024,128], index: 7, kind: input, shape index: {}]   ;;  %s4472_s8 = inlined_call_operand.vmem [shape: f32[1,128], index: 8, kind: input, shape index: {}]   ;;  %s4473_s9 = inlined_call_operand.hbm [shape: f32[16,128], index: 9, kind: output, shape index: {}]  }
   0x1   :  { %15 = vsyncpa [#allocation6], 0 }
   0x2   :  { %16 = vsyncpa [#allocation9], 0 }
   0x3   :  { %17 = vsyncpa [#allocation12], 0 }
   0x4   :  { %18 = vsyncpa [#allocation4], 0  ;;  %s4294_s30 = smov [#allocation5]  }
   0x5   :  { %s36_s10 = sshll.u32 %s4294_s30, 4  ;;  %s37_s10 = int_to_ptr.vmem [resolvable:$true] %s36_s10 }
   0x6   :  { %s4152_s11 = scalar_lea.vmem %s37_s10, 2048  ;;  %p4157_p1 = scmp.lt.s32.totalorder %s37_s10, %s37_s10 }
   0x7   :  { %p4153_p0 = scmp.ne.s32.totalorder %s37_s10, %s4152_s11  ;;  %p4158_p2 = scmp.lt.s32.totalorder %s4152_s11, %s4152_s11 }
   0x9   :  { %p4159_p3 = por %p4158_p2, %p4157_p1 }
   0xb   :  { %p4160_p4 = pnand %p4159_p3, %p4153_p0 }
   0xd   :  { %4163 = shalt.err (!%p4160_p4)
}
   0xe   :  { %s4295_s12 = smov 128   ;;  %s4296_s13 = smov 8  }
   0xf   :  { %42 = dma.hbm_to_vmem [thread:$0]  %s4465_s1, 2048, %s37_s10, [#allocation6], %s4295_s12, %s4295_s12, %s4296_s13  }
  0x10   :  { %s4297_s16 = smov [#allocation8]   ;;  %s4298_s18 = smov [#allocation2]  }
  0x11   :  { %s63_s17 = sshll.u32 %s4297_s16, 4  ;;  %s24_s19 = sshll.u32 %s4298_s18, 4  ;;  %s64_s17 = int_to_ptr.vmem [resolvable:$true] %s63_s17  ;;  %s25_s19 = int_to_ptr.vmem [resolvable:$true] %s24_s19 }
  0x12   :  { %s4172_s20 = scalar_lea.vmem %s64_s17, 64  ;;  %p4177_p6 = scmp.lt.s32.totalorder %s64_s17, %s64_s17 }
  0x13   :  { %p4173_p5 = scmp.ne.s32.totalorder %s64_s17, %s4172_s20  ;;  %p4178_p7 = scmp.lt.s32.totalorder %s4172_s20, %s4172_s20 }
  0x15   :  { %p4179_p8 = por %p4178_p7, %p4177_p6 }
  0x17   :  { %p4180_p9 = pnand %p4179_p8, %p4173_p5 }
  0x19   :  { %4183 = shalt.err (!%p4180_p9)
}
  0x1a   :  { %66 = dma.hbm_to_vmem [thread:$0]  %s4468_s4, 64, %s64_s17, [#allocation9]  }
  0x1b   :  { %s4192_s23 = scalar_lea.vmem %s25_s19, 128  ;;  %p4197_p11 = scmp.lt.s32.totalorder %s25_s19, %s25_s19 }
  0x1c   :  { %p4193_p10 = scmp.ne.s32.totalorder %s25_s19, %s4192_s23  ;;  %p4198_p12 = scmp.lt.s32.totalorder %s4192_s23, %s4192_s23 }
  0x1e   :  { %p4199_p13 = por %p4198_p12, %p4197_p11 }
  0x20   :  { %p4200_p0 = pnand %p4199_p13, %p4193_p10 }
  0x22   :  { %4203 = shalt.err (!%p4200_p0)
}
  0x23   :  { %s4299_s1 = smov 64   ;;  %s4300_s24 = smov 4  }
  0x24   :  { %30 = dma.hbm_to_vmem [thread:$0]  %s4464_s0, 128, %s25_s19, [#allocation3], %s4299_s1, %s4299_s1, %s4300_s24  }
  0x25   :  { %s4301_s27 = smov [#allocation7]  }
  0x26   :  { %s50_s28 = sshll.u32 %s4301_s27, 4  ;;  %s51_s28 = int_to_ptr.vmem [resolvable:$true] %s50_s28 }
  0x27   :  { %s4212_s4 = scalar_lea.vmem %s51_s28, 8192  ;;  %p4217_p2 = scmp.lt.s32.totalorder %s51_s28, %s51_s28 }
  0x28   :  { %p4213_p1 = scmp.ne.s32.totalorder %s51_s28, %s4212_s4  ;;  %p4218_p3 = scmp.lt.s32.totalorder %s4212_s4, %s4212_s4 }
  0x2a   :  { %p4219_p4 = por %p4218_p3, %p4217_p2 }
  0x2c   :  { %p4220_p5 = pnand %p4219_p4, %p4213_p1 }
  0x2e   :  { %4223 = shalt.err (!%p4220_p5)
}
  0x2f   :  { %s4302_s29 = smov 256   ;;  %s4303_s30 = smov 16  }
  0x30   :  { %56 = dma.hbm_to_vmem [thread:$0]  %s4467_s3, 8192, %s51_s28, [#allocation6], %s4302_s29, %s4302_s29, %s4303_s30  }
  0x31   :  { %s4304_s14 = smov [#allocation10]  }
  0x32   :  { %s72_s15 = sshll.u32 %s4304_s14, 4  ;;  %s73_s15 = int_to_ptr.vmem [resolvable:$true] %s72_s15 }
  0x33   :  { %s4232_s0 = scalar_lea.vmem %s73_s15, 32768  ;;  %p4237_p7 = scmp.lt.s32.totalorder %s73_s15, %s73_s15 }
  0x34   :  { %p4233_p6 = scmp.ne.s32.totalorder %s73_s15, %s4232_s0  ;;  %p4238_p8 = scmp.lt.s32.totalorder %s4232_s0, %s4232_s0 }
  0x36   :  { %p4239_p9 = por %p4238_p8, %p4237_p7 }
  0x38   :  { %p4240_p10 = pnand %p4239_p9, %p4233_p6 }
  0x3a   :  { %4243 = shalt.err (!%p4240_p10)
}
  0x3b   :  { %s4305_s16 = smov 512   ;;  %s4306_s17 = smov 32  }
  0x3c   :  { %78 = dma.hbm_to_vmem [thread:$0]  %s4469_s5, 32768, %s73_s15, [#allocation9], %s4305_s16, %s4305_s16, %s4306_s17  }
  0x3d   :  { %s4307_s20 = smov [#allocation11]  }
  0x3e   :  { %s86_s21 = sshll.u32 %s4307_s20, 4  ;;  %s87_s21 = int_to_ptr.vmem [resolvable:$true] %s86_s21 }
  0x3f   :  { %s4252_s3 = scalar_lea.vmem %s87_s21, 8192  ;;  %p4257_p12 = scmp.lt.s32.totalorder %s87_s21, %s87_s21 }
  0x40   :  { %p4253_p11 = scmp.ne.s32.totalorder %s87_s21, %s4252_s3  ;;  %p4258_p13 = scmp.lt.s32.totalorder %s4252_s3, %s4252_s3 }
  0x42   :  { %p4259_p0 = por %p4258_p13, %p4257_p12 }
  0x44   :  { %p4260_p1 = pnand %p4259_p0, %p4253_p11 }
  0x46   :  { %4263 = shalt.err (!%p4260_p1)
}
  0x47   :  { %92 = dma.hbm_to_vmem [thread:$0]  %s4471_s7, 8192, %s87_s21, [#allocation12], %s4299_s1, %s4299_s1, %s4300_s24  }
  0x48   :  { %4284 = dma.done.wait [#allocation3], 128  }
  0x49   :  { %4285 = vsyncadd [#allocation3], 4294967168 }
  0x4a   :  { %4286 = dma.done.wait [#allocation6], 10240  }
  0x4b   :  { %4287 = vsyncadd [#allocation6], 4294957056 }
  0x4c   :  { %4288 = dma.done.wait [#allocation9], 32832  }
  0x4d   :  { %4289 = vsyncadd [#allocation9], 4294934464 }
  0x4e   :  { %4290 = dma.done.wait [#allocation12], 8192  }
  0x4f   :  { %4291 = vsyncadd [#allocation12], 4294959104  ;;  %v4308_v0 = vmov 0   ;;  %v3951_v1 = vld [vmem:[#allocation5 + $0x74] ss:$8 sps:$4 sm:$0xff]  }
  0x50   :  { %263 = vmatprep.mubr.bf16.mxu0 %v4308_v0  ;;  %v3953_v2 = vld [vmem:[#allocation5 + $0x70] ss:$8 sps:$4 sm:$0xff]   ;;  %231 = vmatprep.subr.bf16.mxu0 %v3951_v1  ;;  %v3954_v3 = vld [vmem:[#allocation5 + $0x64] ss:$8 sps:$4 sm:$0xff]   ;;  %v3956_v4 = vld [vmem:[#allocation5 + $0x60] ss:$8 sps:$4 sm:$0xff]  }
  0x51   :  { %232 = vmatpush1.bf16.msra.mxu0 %v3953_v2  ;;  %v3957_v5 = vld [vmem:[#allocation5 + $0x54] ss:$8 sps:$4 sm:$0xff]   ;;  %v3959_v6 = vld [vmem:[#allocation5 + $0x50] ss:$8 sps:$4 sm:$0xff]   ;;  %v3960_v7 = vld [vmem:[#allocation5 + $0x44] ss:$8 sps:$4 sm:$0xff]  }
  0x52   :  { %233 = vmatprep.subr.bf16.mxu0 %v3954_v3  ;;  %v3962_v8 = vld [vmem:[#allocation5 + $0x40] ss:$8 sps:$4 sm:$0xff]   ;;  %v3963_v9 = vld [vmem:[#allocation5 + $0x34] ss:$8 sps:$4 sm:$0xff]   ;;  %v3965_v11 = vld [vmem:[#allocation5 + $0x30] ss:$8 sps:$4 sm:$0xff]  }
  0x53   :  { %v3976_v10 = vld [vmem:[#allocation7 + $0xe4] ss:$16 sps:$4 sm:$0xff]   ;;  %v3981_v12 = vld [vmem:[#allocation7 + $0xe0] ss:$16 sps:$4 sm:$0xff]   ;;  %v3980_v26 = vld [vmem:[#allocation7 + $0xec] ss:$16 sps:$4 sm:$0xff]  }
  0x54   :  { %686 = vmatprep.subr.bf16.mxu1 %v3976_v10  ;;  %v3982_v13 = vld [vmem:[#allocation7 + $0xc4] ss:$16 sps:$4 sm:$0xff]   ;;  %v3987_v15 = vld [vmem:[#allocation7 + $0xc0] ss:$16 sps:$4 sm:$0xff]   ;;  %v3975_v29 = vld [vmem:[#allocation2] sm:$0xff]  }
  0x55   :  { %234 = vmatpush1.bf16.msra.mxu0 %v3956_v4  ;;  %v3966_v14 = vld [vmem:[#allocation5 + $0x24] ss:$8 sps:$4 sm:$0xff]   ;;  %687 = vmatpush1.bf16.msra.mxu1 %v3981_v12  ;;  %v3968_v17 = vld [vmem:[#allocation5 + $0x20] ss:$8 sps:$4 sm:$0xff]   ;;  %v3969_v18 = vld [vmem:[#allocation5 + $0x14] ss:$8 sps:$4 sm:$0xff]  }
  0x56   :  { %235 = vmatprep.subr.bf16.mxu0 %v3957_v5  ;;  %688 = vmatprep.subr.bf16.mxu1 %v3982_v13  ;;  %v3988_v16 = vld [vmem:[#allocation7 + $0xa4] ss:$16 sps:$4 sm:$0xff]   ;;  %v3993_v19 = vld [vmem:[#allocation7 + $0xa0] ss:$16 sps:$4 sm:$0xff]   ;;  %v3978_v30 = vld [vmem:[#allocation7 + $0xe8] ss:$16 sps:$4 sm:$0xff]  }
  0x57   :  { %v3994_v20 = vld [vmem:[#allocation7 + $0x84] ss:$16 sps:$4 sm:$0xff]   ;;  %v3971_v21 = vld [vmem:[#allocation5 + $0x10] ss:$8 sps:$4 sm:$0xff]   ;;  %v3974_v25 = vld [vmem:[#allocation5] ss:$8 sps:$4 sm:$0xff]  }
  0x58   :  { %v3972_v22 = vld [vmem:[#allocation5 + $0x4] ss:$8 sps:$4 sm:$0xff]   ;;  %v3999_v23 = vld [vmem:[#allocation7 + $0x80] ss:$16 sps:$4 sm:$0xff]   ;;  %v3984_v34 = vld [vmem:[#allocation7 + $0xc8] ss:$16 sps:$4 sm:$0xff]  }
  0x59   :  { %236 = vmatpush1.bf16.msra.mxu0 %v3959_v6  ;;  %689 = vmatpush1.bf16.msra.mxu1 %v3987_v15  ;;  %v4000_v24 = vld [vmem:[#allocation7 + $0x64] ss:$16 sps:$4 sm:$0xff]   ;;  %v4005_v27 = vld [vmem:[#allocation7 + $0x60] ss:$16 sps:$4 sm:$0xff]   ;;  %v3986_v31 = vld [vmem:[#allocation7 + $0xcc] ss:$16 sps:$4 sm:$0xff]  }
  0x5a   :  { %237 = vmatprep.subr.bf16.mxu0 %v3960_v7  ;;  %690 = vmatprep.subr.bf16.mxu1 %v3988_v16  ;;  %v4006_v28 = vld [vmem:[#allocation7 + $0x44] ss:$16 sps:$4 sm:$0xff]   ;;  %v4011_v32 = vld [vmem:[#allocation7 + $0x40] ss:$16 sps:$4 sm:$0xff]   ;;  %v3992_v35 = vld [vmem:[#allocation7 + $0xac] ss:$16 sps:$4 sm:$0xff]  }
  0x5b   :  { %v4012_v33 = vld [vmem:[#allocation7 + $0x24] ss:$16 sps:$4 sm:$0xff]   ;;  %v4017_v36 = vld [vmem:[#allocation7 + $0x20] ss:$16 sps:$4 sm:$0xff]   ;;  %v3990_v38 = vld [vmem:[#allocation7 + $0xa8] ss:$16 sps:$4 sm:$0xff]  }
  0x5c   :  { %v4018_v37 = vld [vmem:[#allocation7 + $0x4] ss:$16 sps:$4 sm:$0xff]   ;;  %v3998_v39 = vld [vmem:[#allocation7 + $0x8c] ss:$16 sps:$4 sm:$0xff]   ;;  %v4023_v40 = vld [vmem:[#allocation7] ss:$16 sps:$4 sm:$0xff]  }
  0x5d   :  { %238 = vmatpush1.bf16.msra.mxu0 %v3962_v8  ;;  %691 = vmatpush1.bf16.msra.mxu1 %v3993_v19  ;;  %v4024_v41 = vld [vmem:[#allocation7 + $0x1e4] ss:$16 sps:$4 sm:$0xff]   ;;  %v3996_v42 = vld [vmem:[#allocation7 + $0x88] ss:$16 sps:$4 sm:$0xff]   ;;  %v4004_v43 = vld [vmem:[#allocation7 + $0x6c] ss:$16 sps:$4 sm:$0xff]  }
  0x5e   :  { %239 = vmatprep.subr.bf16.mxu0 %v3963_v9  ;;  %692 = vmatprep.subr.bf16.mxu1 %v3994_v20  ;;  %v4029_v44 = vld [vmem:[#allocation7 + $0x1e0] ss:$16 sps:$4 sm:$0xff]   ;;  %v4030_v45 = vld [vmem:[#allocation7 + $0x1c4] ss:$16 sps:$4 sm:$0xff]   ;;  %v4002_v46 = vld [vmem:[#allocation7 + $0x68] ss:$16 sps:$4 sm:$0xff]  }
  0x5f   :  { %v4010_v47 = vld [vmem:[#allocation7 + $0x4c] ss:$16 sps:$4 sm:$0xff]   ;;  %v4035_v48 = vld [vmem:[#allocation7 + $0x1c0] ss:$16 sps:$4 sm:$0xff]   ;;  %v4036_v49 = vld [vmem:[#allocation7 + $0x1a4] ss:$16 sps:$4 sm:$0xff]  }
  0x60   :  { %v4008_v50 = vld [vmem:[#allocation7 + $0x48] ss:$16 sps:$4 sm:$0xff]   ;;  %v4016_v51 = vld [vmem:[#allocation7 + $0x2c] ss:$16 sps:$4 sm:$0xff]   ;;  %v4041_v52 = vld [vmem:[#allocation7 + $0x1a0] ss:$16 sps:$4 sm:$0xff]  }
  0x61   :  { %240 = vmatpush1.bf16.msra.mxu0 %v3965_v11  ;;  %693 = vmatpush1.bf16.msra.mxu1 %v3999_v23  ;;  %v4042_v53 = vld [vmem:[#allocation7 + $0x184] ss:$16 sps:$4 sm:$0xff]   ;;  %v4014_v54 = vld [vmem:[#allocation7 + $0x28] ss:$16 sps:$4 sm:$0xff]   ;;  %v4022_v55 = vld [vmem:[#allocation7 + $0xc] ss:$16 sps:$4 sm:$0xff]  }
  0x62   :  { %241 = vmatprep.subr.bf16.mxu0 %v3966_v14  ;;  %694 = vmatprep.subr.bf16.mxu1 %v4000_v24  ;;  %v4047_v56 = vld [vmem:[#allocation7 + $0x180] ss:$16 sps:$4 sm:$0xff]   ;;  %v4020_v57 = vld [vmem:[#allocation7 + $0x8] ss:$16 sps:$4 sm:$0xff]   ;;  %v4028_v58 = vld [vmem:[#allocation7 + $0x1ec] ss:$16 sps:$4 sm:$0xff]  }
  0x63   :  { %v4026_v59 = vld [vmem:[#allocation7 + $0x1e8] ss:$16 sps:$4 sm:$0xff]   ;;  %v4034_v60 = vld [vmem:[#allocation7 + $0x1cc] ss:$16 sps:$4 sm:$0xff]   ;;  %v4048_v2 = vld [vmem:[#allocation7 + $0x164] ss:$16 sps:$4 sm:$0xff]  }
  0x64   :  { %v4032_v61 = vld [vmem:[#allocation7 + $0x1c8] ss:$16 sps:$4 sm:$0xff]   ;;  %v4040_v62 = vld [vmem:[#allocation7 + $0x1ac] ss:$16 sps:$4 sm:$0xff]   ;;  %v4053_v5 = vld [vmem:[#allocation7 + $0x160] ss:$16 sps:$4 sm:$0xff]  }
  0x65   :  { %242 = vmatpush1.bf16.msra.mxu0 %v3968_v17  ;;  %695 = vmatpush1.bf16.msra.mxu1 %v4005_v27  ;;  %v4038_v63 = vld [vmem:[#allocation7 + $0x1a8] ss:$16 sps:$4 sm:$0xff]   ;;  %v4046_v0 = vld [vmem:[#allocation7 + $0x18c] ss:$16 sps:$4 sm:$0xff]   ;;  %v4054_v6 = vld [vmem:[#allocation7 + $0x144] ss:$16 sps:$4 sm:$0xff]  }
  0x66   :  { %243 = vmatprep.subr.bf16.mxu0 %v3969_v18  ;;  %696 = vmatprep.subr.bf16.mxu1 %v4006_v28  ;;  %v4044_v1 = vld [vmem:[#allocation7 + $0x188] ss:$16 sps:$4 sm:$0xff]   ;;  %v4052_v3 = vld [vmem:[#allocation7 + $0x16c] ss:$16 sps:$4 sm:$0xff]   ;;  %v4059_v9 = vld [vmem:[#allocation7 + $0x140] ss:$16 sps:$4 sm:$0xff]  }
  0x67   :  { %v4050_v4 = vld [vmem:[#allocation7 + $0x168] ss:$16 sps:$4 sm:$0xff]   ;;  %v4058_v7 = vld [vmem:[#allocation7 + $0x14c] ss:$16 sps:$4 sm:$0xff]   ;;  %v4060_v10 = vld [vmem:[#allocation7 + $0x124] ss:$16 sps:$4 sm:$0xff]  }
  0x68   :  { %v4056_v8 = vld [vmem:[#allocation7 + $0x148] ss:$16 sps:$4 sm:$0xff]   ;;  %v4064_v11 = vld [vmem:[#allocation7 + $0x12c] ss:$16 sps:$4 sm:$0xff]   ;;  %v4065_v13 = vld [vmem:[#allocation7 + $0x120] ss:$16 sps:$4 sm:$0xff]  }
  0x69   :  { %244 = vmatpush1.bf16.msra.mxu0 %v3971_v21  ;;  %697 = vmatpush1.bf16.msra.mxu1 %v4011_v32  ;;  %v4062_v12 = vld [vmem:[#allocation7 + $0x128] ss:$16 sps:$4 sm:$0xff]   ;;  %v4066_v14 = vld [vmem:[#allocation7 + $0x104] ss:$16 sps:$4 sm:$0xff]   ;;  %v4070_v16 = vld [vmem:[#allocation7 + $0x10c] ss:$16 sps:$4 sm:$0xff]  }
  0x6a   :  { %245 = vmatprep.subr.bf16.mxu0 %v3972_v22  ;;  %698 = vmatprep.subr.bf16.mxu1 %v4012_v33  ;;  %v4068_v15 = vld [vmem:[#allocation7 + $0x108] ss:$16 sps:$4 sm:$0xff]   ;;  %v4071_v17 = vld [vmem:[#allocation7 + $0x100] ss:$16 sps:$4 sm:$0xff]  }
  0x6b   :  { %v840_v18 = vld [vmem:[#allocation10 + $0x1c0] sm:$0xff] }
  0x6c   :  { %v844_v19 = vld [vmem:[#allocation10 + $0x1e0] sm:$0xff] }
  0x6d   :  { %246 = vmatpush1.bf16.msra.mxu0 %v3974_v25  ;;  %699 = vmatpush1.bf16.msra.mxu1 %v4017_v36  ;;  %v968_v20 = vld [vmem:[#allocation10 + $0x5c0] sm:$0xff]  ;;  %v3582_v21 = vcombine.low %v840_v18, %v844_v19  ;;  %v3583_v22 = vcombine.high %v840_v18, %v844_v19 }
  0x6e   :  { %729 = vmatprep.subr.bf16.mxu0 %v3980_v26  ;;  %700 = vmatprep.subr.bf16.mxu1 %v4018_v37  ;;  %v972_v23 = vld [vmem:[#allocation10 + $0x5e0] sm:$0xff]  ;;  %v135_v26 = vlaneseq }
  0x6f   :  { %v3710_v24 = vcombine.low %v968_v20, %v972_v23  ;;  %v3711_v25 = vcombine.high %v968_v20, %v972_v23  ;;  %v920_v23 = vld [vmem:[#allocation10 + $0x440] sm:$0xff] }
  0x70   :  { %264 = vmatmul.mubr.bf16.vlgmr.msra.gmra.mxu0 %v3975_v29  ;;  %v4387_v27 = vshrl.u32 %v135_v26, 7  ;;  %v133_v29 = vld [vmem:[%s4466_s2] sm:$0x3] }
  0x71   :  { %730 = vmatpush1.bf16.msra.mxu0 %v3978_v30  ;;  %701 = vmatpush1.bf16.msra.mxu1 %v4023_v40 }
  0x72   :  { %731 = vmatprep.subr.bf16.mxu0 %v3986_v31  ;;  %702 = vmatprep.subr.bf16.mxu1 %v4024_v41  ;;  %v4390_v28 = vsub.s32 0, %v4387_v27  ;;  %v4396_v30 = vsub.s32 1, %v4387_v27 }
  0x74   :  { %v138_v32 = vrot.slane %v133_v29, %v4390_v28 }
  0x75   :  { %732 = vmatpush1.bf16.msra.mxu0 %v3984_v34  ;;  %703 = vmatpush2.bf16.msra.mxu1 %v4029_v44  ;;  %v142_v34 = vrot.slane %v133_v29, %v4396_v30  ;;  %v832_v44 = vld [vmem:[#allocation10 + $0x180] sm:$0xff] }
  0x76   :  { %733 = vmatprep.subr.bf16.mxu0 %v3992_v35  ;;  %704 = vmatprep.subr.bf16.mxu1 %v4030_v45 }
  0x79   :  { %734 = vmatpush1.bf16.msra.mxu0 %v3990_v38  ;;  %705 = vmatpush2.bf16.msra.mxu1 %v4035_v48  ;;  %v964_v48 = vld [vmem:[#allocation10 + $0x5a0] sm:$0xff] }
  0x7a   :  { %735 = vmatprep.subr.bf16.mxu0 %v3998_v39  ;;  %706 = vmatprep.subr.bf16.mxu1 %v4036_v49 }
  0x7d   :  { %736 = vmatpush1.bf16.msra.mxu0 %v3996_v42  ;;  %707 = vmatpush2.bf16.msra.mxu1 %v4041_v52 }
  0x7e   :  { %737 = vmatprep.subr.bf16.mxu0 %v4004_v43  ;;  %708 = vmatprep.subr.bf16.mxu1 %v4042_v53  ;;  %v824_v53 = vld [vmem:[#allocation10 + $0x140] sm:$0xff] }
  0x81   :  { %738 = vmatpush1.bf16.msra.mxu0 %v4002_v46  ;;  %709 = vmatpush2.bf16.msra.mxu1 %v4047_v56  ;;  %v836_v46 = vld [vmem:[#allocation10 + $0x1a0] sm:$0xff] }
  0x82   :  { %739 = vmatprep.subr.bf16.mxu0 %v4010_v47  ;;  %710 = vmatprep.subr.bf16.mxu1 %v4048_v2  ;;  %v960_v47 = vld [vmem:[#allocation10 + $0x580] sm:$0xff] }
  0x83   :  { %v3703_v52 = vcombine.high %v960_v47, %v964_v48  ;;  %v956_v56 = vld [vmem:[#allocation10 + $0x560] sm:$0xff] }
  0x85   :  { %740 = vmatpush1.bf16.msra.mxu0 %v4008_v50  ;;  %711 = vmatpush2.bf16.msra.mxu1 %v4053_v5  ;;  %v808_v5 = vld [vmem:[#allocation10 + $0xc0] sm:$0xff] }
  0x86   :  { %741 = vmatprep.subr.bf16.mxu0 %v4016_v51  ;;  %712 = vmatprep.subr.bf16.mxu1 %v4054_v6  ;;  %v3575_v51 = vcombine.high %v832_v44, %v836_v46  ;;  %v812_v6 = vld [vmem:[#allocation10 + $0xe0] sm:$0xff] }
  0x89   :  { %742 = vmatpush1.bf16.msra.mxu0 %v4014_v54  ;;  %713 = vmatpush2.bf16.msra.mxu1 %v4059_v9  ;;  %v828_v54 = vld [vmem:[#allocation10 + $0x160] sm:$0xff] }
  0x8a   :  { %743 = vmatprep.subr.bf16.mxu0 %v4022_v55  ;;  %714 = vmatprep.subr.bf16.mxu1 %v4060_v10  ;;  %v952_v55 = vld [vmem:[#allocation10 + $0x540] sm:$0xff] }
  0x8b   :  { %v3694_v2 = vcombine.low %v952_v55, %v956_v56 }
  0x8d   :  { %744 = vmatpush1.bf16.msra.mxu0 %v4020_v57  ;;  %715 = vmatpush2.bf16.msra.mxu1 %v4065_v13  ;;  %v3574_v57 = vcombine.low %v832_v44, %v836_v46  ;;  %v800_v13 = vld [vmem:[#allocation10 + $0x80] sm:$0xff] }
  0x8e   :  { %745 = vmatprep.subr.bf16.mxu0 %v4028_v58  ;;  %716 = vmatprep.subr.bf16.mxu1 %v4066_v14  ;;  %v3702_v58 = vcombine.low %v960_v47, %v964_v48  ;;  %v804_v14 = vld [vmem:[#allocation10 + $0xa0] sm:$0xff] }
  0x8f   :  { %v3543_v19 = vcombine.high %v800_v13, %v804_v14  ;;  %v896_v48 = vld [vmem:[#allocation10 + $0x380] sm:$0xff] }
  0x91   :  { %746 = vmatpush2.bf16.msra.mxu0 %v4026_v59  ;;  %717 = vmatpush2.bf16.msra.mxu1 %v4071_v17  ;;  %v3567_v59 = vcombine.high %v824_v53, %v828_v54  ;;  %v3550_v17 = vcombine.low %v808_v5, %v812_v6 }
  0x92   :  { %747 = vmatprep.subr.bf16.mxu0 %v4034_v60  ;;  %2362 = vmatprep.subr.bf16.mxu1 %v3583_v22  ;;  %v3695_v60 = vcombine.high %v952_v55, %v956_v56  ;;  %v796_v22 = vld [vmem:[#allocation10 + $0x60] sm:$0xff] }
  0x93   :  { %v888_v56 = vld [vmem:[#allocation10 + $0x340] sm:$0xff] }
  0x95   :  { %748 = vmatpush2.bf16.msra.mxu0 %v4032_v61  ;;  %v816_v61 = vld [vmem:[#allocation10 + $0x100] sm:$0xff] }
  0x96   :  { %749 = vmatprep.subr.bf16.mxu0 %v4040_v62  ;;  %v820_v62 = vld [vmem:[#allocation10 + $0x120] sm:$0xff] }
  0x97   :  { %v3558_v9 = vcombine.low %v816_v61, %v820_v62 }
  0x99   :  { %750 = vmatpush2.bf16.msra.mxu0 %v4038_v63  ;;  %v944_v63 = vld [vmem:[#allocation10 + $0x500] sm:$0xff] }
  0x9a   :  { %751 = vmatprep.subr.bf16.mxu0 %v4046_v0  ;;  %v948_v0 = vld [vmem:[#allocation10 + $0x520] sm:$0xff] }
  0x9b   :  { %v3686_v10 = vcombine.low %v944_v63, %v948_v0 }
  0x9d   :  { %752 = vmatpush2.bf16.msra.mxu0 %v4044_v1  ;;  %v3566_v1 = vcombine.low %v824_v53, %v828_v54 }
  0x9e   :  { %753 = vmatprep.subr.bf16.mxu0 %v4052_v3  ;;  %v3559_v3 = vcombine.high %v816_v61, %v820_v62 }
  0xa1   :  { %754 = vmatpush2.bf16.msra.mxu0 %v4050_v4  ;;  %v3687_v4 = vcombine.high %v944_v63, %v948_v0  ;;  %v880_v0 = vld [vmem:[#allocation10 + $0x300] sm:$0xff] }
  0xa2   :  { %755 = vmatprep.subr.bf16.mxu0 %v4058_v7  ;;  %v936_v7 = vld [vmem:[#allocation10 + $0x4c0] sm:$0xff] }
  0xa5   :  { %756 = vmatpush2.bf16.msra.mxu0 %v4056_v8  ;;  %v940_v8 = vld [vmem:[#allocation10 + $0x4e0] sm:$0xff] }
  0xa6   :  { %757 = vmatprep.subr.bf16.mxu0 %v4064_v11  ;;  %v3551_v11 = vcombine.high %v808_v5, %v812_v6  ;;  %v3678_v18 = vcombine.low %v936_v7, %v940_v8 }
  0xa9   :  { %758 = vmatpush2.bf16.msra.mxu0 %v4062_v12  ;;  %v3679_v12 = vcombine.high %v936_v7, %v940_v8  ;;  %v872_v8 = vld [vmem:[#allocation10 + $0x2c0] sm:$0xff] }
  0xaa   :  { %759 = vmatprep.subr.bf16.mxu0 %v4070_v16  ;;  %v932_v16 = vld [vmem:[#allocation10 + $0x4a0] sm:$0xff] }
  0xad   :  { %760 = vmatpush2.bf16.msra.mxu0 %v4068_v15  ;;  %v928_v15 = vld [vmem:[#allocation10 + $0x480] sm:$0xff] }
  0xae   :  { %2405 = vmatprep.subr.bf16.mxu0 %v3711_v25  ;;  %v3671_v20 = vcombine.high %v928_v15, %v932_v16  ;;  %v3542_v25 = vcombine.low %v800_v13, %v804_v14  ;;  %v3670_v26 = vcombine.low %v928_v15, %v932_v16 }
 0x130   :  { %v265_v31 = vpop.f32.mrf.mxu0 }
 0x131   :  { %v266_v36 = vadd.f32 %v265_v31, %v138_v32 }
 0x132   :  { %v267_v33 = vpop.f32.mrf.mxu0 }
 0x133   :  { %v268_v39 = vadd.f32 %v267_v33, %v142_v34  ;;  %v788_v33 = vld [vmem:[#allocation10 + $0x20] sm:$0xff] }
 0x134   :  { %v269_v35 = vpop.f32.mrf.mxu0 }
 0x135   :  { %v270_v37 = vadd.f32 %v269_v35, %v138_v32  ;;  %v784_v32 = vld [vmem:[#allocation10] sm:$0xff] }
 0x136   :  { %v271_v38 = vpop.f32.mrf.mxu0  ;;  %v916_v35 = vld [vmem:[#allocation10 + $0x420] sm:$0xff]  ;;  %v3526_v44 = vcombine.low %v784_v32, %v788_v33 }
 0x137   :  { %v274_v40 = vpack.c.bf16 %v270_v37, %v266_v36  ;;  %v272_v41 = vadd.f32 %v271_v38, %v142_v34  ;;  %v912_v34 = vld [vmem:[#allocation10 + $0x400] sm:$0xff]  ;;  %v3527_v38 = vcombine.high %v784_v32, %v788_v33 }
 0x138   :  { %v988_v33 = vld [vmem:[#allocation10 + $0x660] sm:$0xff] }
 0x139   :  { %v275_v42 = vpack.c.bf16 %v272_v41, %v268_v39  ;;  %v276_v43 = vmul.bf16 1045249613, %v274_v40  ;;  %v3655_v39 = vcombine.high %v912_v34, %v916_v35  ;;  %v908_v41 = vld [vmem:[#allocation10 + $0x3e0] sm:$0xff] }
 0x13b   :  { %v277_v45 = vmul.bf16 1045249613, %v275_v42  ;;  %v278_v50 = vmax.bf16 %v276_v43, %v274_v40  ;;  %v904_v40 = vld [vmem:[#allocation10 + $0x3c0] sm:$0xff] }
 0x13c   :  { %v1036_v43 = vld [vmem:[#allocation10 + $0x7e0] sm:$0xff]  ;;  %v3647_v46 = vcombine.high %v904_v40, %v908_v41 }
 0x13d   :  { %v279_v49 = vmax.bf16 %v277_v45, %v275_v42  ;;  %v1032_v42 = vld [vmem:[#allocation10 + $0x7c0] sm:$0xff]  ;;  %v3654_v45 = vcombine.low %v912_v34, %v916_v35 }
 0x13e   :  { %v3775_v47 = vcombine.high %v1032_v42, %v1036_v43  ;;  %v3774_v53 = vcombine.low %v1032_v42, %v1036_v43 }
 0x13f   :  { %718 = vmatprep.mubr.bf16.mxu1 %v279_v49  ;;  %761 = vmatprep.mubr.bf16.mxu0 %v279_v49  ;;  %v900_v49 = vld [vmem:[#allocation10 + $0x3a0] sm:$0xff] }
 0x140   :  { %719 = vmatmul.mubr.bf16.vlgmr.msra.gmra.mxu1 %v278_v50  ;;  %762 = vmatmul.mubr.bf16.vlgmr.msra.gmra.mxu0 %v278_v50  ;;  %v1024_v50 = vld [vmem:[#allocation10 + $0x780] sm:$0xff]  ;;  %v3639_v54 = vcombine.high %v896_v48, %v900_v49 }
 0x141   :  { %2363 = vmatpush1.bf16.msra.mxu1 %v3582_v21  ;;  %2406 = vmatpush1.bf16.msra.mxu0 %v3710_v24  ;;  %v792_v21 = vld [vmem:[#allocation10 + $0x40] sm:$0xff] }
 0x142   :  { %2364 = vmatprep.subr.bf16.mxu1 %v3575_v51  ;;  %2407 = vmatprep.subr.bf16.mxu0 %v3703_v52  ;;  %v924_v24 = vld [vmem:[#allocation10 + $0x460] sm:$0xff]  ;;  %v3535_v29 = vcombine.high %v792_v21, %v796_v22  ;;  %v3534_v36 = vcombine.low %v792_v21, %v796_v22  ;;  %v3646_v52 = vcombine.low %v904_v40, %v908_v41 }
 0x143   :  { %v3663_v31 = vcombine.high %v920_v23, %v924_v24  ;;  %v3662_v37 = vcombine.low %v920_v23, %v924_v24  ;;  %v1028_v51 = vld [vmem:[#allocation10 + $0x7a0] sm:$0xff] }
 0x144   :  { %v3767_v55 = vcombine.high %v1024_v50, %v1028_v51  ;;  %v3766_v61 = vcombine.low %v1024_v50, %v1028_v51  ;;  %v996_v22 = vld [vmem:[#allocation10 + $0x6a0] sm:$0xff] }
 0x145   :  { %2365 = vmatpush1.bf16.msra.mxu1 %v3574_v57  ;;  %2408 = vmatpush1.bf16.msra.mxu0 %v3702_v58  ;;  %v892_v57 = vld [vmem:[#allocation10 + $0x360] sm:$0xff] }
 0x146   :  { %2366 = vmatprep.subr.bf16.mxu1 %v3567_v59  ;;  %2409 = vmatprep.subr.bf16.mxu0 %v3695_v60  ;;  %v1016_v58 = vld [vmem:[#allocation10 + $0x740] sm:$0xff]  ;;  %v3638_v60 = vcombine.low %v896_v48, %v900_v49  ;;  %v3631_v62 = vcombine.high %v888_v56, %v892_v57  ;;  %v973_v49 = vld [vmem:[#allocation10 + $0x5e8] sm:$0xff] }
 0x147   :  { %v1020_v59 = vld [vmem:[#allocation10 + $0x760] sm:$0xff] }
 0x148   :  { %v3759_v63 = vcombine.high %v1016_v58, %v1020_v59  ;;  %v3758_v5 = vcombine.low %v1016_v58, %v1020_v59  ;;  %v980_v41 = vld [vmem:[#allocation10 + $0x620] sm:$0xff] }
 0x149   :  { %2367 = vmatpush1.bf16.msra.mxu1 %v3566_v1  ;;  %2410 = vmatpush1.bf16.msra.mxu0 %v3694_v2  ;;  %v884_v1 = vld [vmem:[#allocation10 + $0x320] sm:$0xff] }
 0x14a   :  { %2368 = vmatprep.subr.bf16.mxu1 %v3559_v3  ;;  %2411 = vmatprep.subr.bf16.mxu0 %v3687_v4  ;;  %v1008_v2 = vld [vmem:[#allocation10 + $0x700] sm:$0xff]  ;;  %v3630_v4 = vcombine.low %v888_v56, %v892_v57  ;;  %v3623_v6 = vcombine.high %v880_v0, %v884_v1 }
 0x14b   :  { %v1012_v3 = vld [vmem:[#allocation10 + $0x720] sm:$0xff] }
 0x14c   :  { %v3751_v7 = vcombine.high %v1008_v2, %v1012_v3  ;;  %v3750_v13 = vcombine.low %v1008_v2, %v1012_v3 }
 0x14d   :  { %2369 = vmatpush1.bf16.msra.mxu1 %v3558_v9  ;;  %2412 = vmatpush1.bf16.msra.mxu0 %v3686_v10  ;;  %v876_v9 = vld [vmem:[#allocation10 + $0x2e0] sm:$0xff] }
 0x14e   :  { %2370 = vmatprep.subr.bf16.mxu1 %v3551_v11  ;;  %2413 = vmatprep.subr.bf16.mxu0 %v3679_v12  ;;  %v1000_v10 = vld [vmem:[#allocation10 + $0x6c0] sm:$0xff]  ;;  %v3622_v12 = vcombine.low %v880_v0, %v884_v1  ;;  %v3615_v14 = vcombine.high %v872_v8, %v876_v9  ;;  %v3614_v16 = vcombine.low %v872_v8, %v876_v9 }
 0x14f   :  { %v1004_v11 = vld [vmem:[#allocation10 + $0x6e0] sm:$0xff] }
 0x150   :  { %v3743_v15 = vcombine.high %v1000_v10, %v1004_v11 }
 0x151   :  { %2371 = vmatpush1.bf16.msra.mxu1 %v3550_v17  ;;  %2414 = vmatpush1.bf16.msra.mxu0 %v3678_v18  ;;  %v3742_v17 = vcombine.low %v1000_v10, %v1004_v11  ;;  %v864_v18 = vld [vmem:[#allocation10 + $0x280] sm:$0xff] }
 0x152   :  { %2372 = vmatprep.subr.bf16.mxu1 %v3543_v19  ;;  %2415 = vmatprep.subr.bf16.mxu0 %v3671_v20  ;;  %v868_v19 = vld [vmem:[#allocation10 + $0x2a0] sm:$0xff] }
 0x153   :  { %v992_v20 = vld [vmem:[#allocation10 + $0x680] sm:$0xff]  ;;  %v3607_v21 = vcombine.high %v864_v18, %v868_v19  ;;  %v3606_v23 = vcombine.low %v864_v18, %v868_v19 }
 0x154   :  { %v3734_v24 = vcombine.low %v992_v20, %v996_v22 }
 0x155   :  { %2373 = vmatpush1.bf16.msra.mxu1 %v3542_v25  ;;  %2416 = vmatpush1.bf16.msra.mxu0 %v3670_v26  ;;  %v3735_v25 = vcombine.high %v992_v20, %v996_v22  ;;  %v856_v26 = vld [vmem:[#allocation10 + $0x240] sm:$0xff]  ;;  %v833_v20 = vld [vmem:[#allocation10 + $0x188] sm:$0xff] }
 0x156   :  { %2374 = vmatprep.subr.bf16.mxu1 %v3535_v29  ;;  %2417 = vmatprep.subr.bf16.mxu0 %v3663_v31  ;;  %v860_v29 = vld [vmem:[#allocation10 + $0x260] sm:$0xff]  ;;  %v961_v22 = vld [vmem:[#allocation10 + $0x588] sm:$0xff] }
 0x157   :  { %v984_v31 = vld [vmem:[#allocation10 + $0x640] sm:$0xff]  ;;  %v3599_v32 = vcombine.high %v856_v26, %v860_v29  ;;  %v3598_v34 = vcombine.low %v856_v26, %v860_v29 }
 0x158   :  { %v3726_v35 = vcombine.low %v984_v31, %v988_v33 }
 0x159   :  { %2375 = vmatpush1.bf16.msra.mxu1 %v3534_v36  ;;  %2418 = vmatpush1.bf16.msra.mxu0 %v3662_v37  ;;  %v3727_v36 = vcombine.high %v984_v31, %v988_v33  ;;  %v848_v37 = vld [vmem:[#allocation10 + $0x200] sm:$0xff]  ;;  %v825_v31 = vld [vmem:[#allocation10 + $0x148] sm:$0xff] }
 0x15a   :  { %2376 = vmatprep.subr.bf16.mxu1 %v3527_v38  ;;  %2419 = vmatprep.subr.bf16.mxu0 %v3655_v39  ;;  %v852_v38 = vld [vmem:[#allocation10 + $0x220] sm:$0xff] }
 0x15b   :  { %v976_v39 = vld [vmem:[#allocation10 + $0x600] sm:$0xff]  ;;  %v3591_v40 = vcombine.high %v848_v37, %v852_v38  ;;  %v3590_v42 = vcombine.low %v848_v37, %v852_v38 }
 0x15c   :  { %v3718_v43 = vcombine.low %v976_v39, %v980_v41 }
 0x15d   :  { %2377 = vmatpush1.bf16.msra.mxu1 %v3526_v44  ;;  %2420 = vmatpush1.bf16.msra.mxu0 %v3654_v45  ;;  %v3719_v44 = vcombine.high %v976_v39, %v980_v41  ;;  %v841_v45 = vld [vmem:[#allocation10 + $0x1c8] sm:$0xff] }
 0x15e   :  { %2378 = vmatprep.subr.bf16.mxu1 %v3647_v46  ;;  %2421 = vmatprep.subr.bf16.mxu0 %v3775_v47  ;;  %v845_v46 = vld [vmem:[#allocation10 + $0x1e8] sm:$0xff] }
 0x15f   :  { %v969_v47 = vld [vmem:[#allocation10 + $0x5c8] sm:$0xff]  ;;  %v3585_v48 = vcombine.high %v841_v45, %v845_v46  ;;  %v3584_v50 = vcombine.low %v841_v45, %v845_v46 }
 0x160   :  { %v3712_v51 = vcombine.low %v969_v47, %v973_v49  ;;  %v817_v41 = vld [vmem:[#allocation10 + $0x108] sm:$0xff] }
 0x161   :  { %2379 = vmatpush2.bf16.msra.mxu1 %v3646_v52  ;;  %2422 = vmatpush2.bf16.msra.mxu0 %v3774_v53  ;;  %v3713_v52 = vcombine.high %v969_v47, %v973_v49  ;;  %v356_v53 = vsub.s32 2, %v4387_v27  ;;  %v809_v49 = vld [vmem:[#allocation10 + $0xc8] sm:$0xff] }
 0x162   :  { %2380 = vmatprep.subr.bf16.mxu1 %v3639_v54  ;;  %2423 = vmatprep.subr.bf16.mxu0 %v3767_v55  ;;  %v344_v54 = vld [vmem:[#allocation8] sm:$0xf]  ;;  %v360_v55 = vsub.s32 3, %v4387_v27 }
 0x163   :  { %v349_v58 = vrot.slane %v344_v54, %v4390_v28  ;;  %v357_v59 = vrot.slane %v344_v54, %v356_v53 }
 0x165   :  { %2381 = vmatpush2.bf16.msra.mxu1 %v3638_v60  ;;  %2424 = vmatpush2.bf16.msra.mxu0 %v3766_v61  ;;  %v353_v60 = vrot.slane %v344_v54, %v4396_v30 }
 0x166   :  { %2382 = vmatprep.subr.bf16.mxu1 %v3631_v62  ;;  %2425 = vmatprep.subr.bf16.mxu0 %v3759_v63  ;;  %v361_v62 = vrot.slane %v344_v54, %v360_v55 }
 0x169   :  { %2383 = vmatpush2.bf16.msra.mxu1 %v3630_v4  ;;  %2426 = vmatpush2.bf16.msra.mxu0 %v3758_v5 }
 0x16a   :  { %2384 = vmatprep.subr.bf16.mxu1 %v3623_v6  ;;  %2427 = vmatprep.subr.bf16.mxu0 %v3751_v7 }
 0x16d   :  { %2385 = vmatpush2.bf16.msra.mxu1 %v3622_v12  ;;  %2428 = vmatpush2.bf16.msra.mxu0 %v3750_v13 }
 0x16e   :  { %2386 = vmatprep.subr.bf16.mxu1 %v3615_v14  ;;  %2429 = vmatprep.subr.bf16.mxu0 %v3743_v15 }
 0x171   :  { %2387 = vmatpush2.bf16.msra.mxu1 %v3614_v16  ;;  %2430 = vmatpush2.bf16.msra.mxu0 %v3742_v17 }
 0x172   :  { %2388 = vmatprep.subr.bf16.mxu1 %v3607_v21  ;;  %2431 = vmatprep.subr.bf16.mxu0 %v3735_v25  ;;  %v837_v21 = vld [vmem:[#allocation10 + $0x1a8] sm:$0xff] }
 0x173   :  { %v3576_v37 = vcombine.low %v833_v20, %v837_v21 }
 0x175   :  { %2389 = vmatpush2.bf16.msra.mxu1 %v3606_v23  ;;  %2432 = vmatpush2.bf16.msra.mxu0 %v3734_v24  ;;  %v965_v23 = vld [vmem:[#allocation10 + $0x5a8] sm:$0xff] }
 0x176   :  { %2390 = vmatprep.subr.bf16.mxu1 %v3599_v32  ;;  %2433 = vmatprep.subr.bf16.mxu0 %v3727_v36  ;;  %v3577_v32 = vcombine.high %v833_v20, %v837_v21  ;;  %v3705_v33 = vcombine.high %v961_v22, %v965_v23  ;;  %v957_v36 = vld [vmem:[#allocation10 + $0x568] sm:$0xff]  ;;  %v3704_v38 = vcombine.low %v961_v22, %v965_v23 }
 0x177   :  { %v909_v20 = vld [vmem:[#allocation10 + $0x3e8] sm:$0xff] }
 0x178   :  { %v1033_v21 = vld [vmem:[#allocation10 + $0x7c8] sm:$0xff] }
 0x179   :  { %2391 = vmatpush2.bf16.msra.mxu1 %v3598_v34  ;;  %2434 = vmatpush2.bf16.msra.mxu0 %v3726_v35  ;;  %v829_v34 = vld [vmem:[#allocation10 + $0x168] sm:$0xff] }
 0x17a   :  { %2392 = vmatprep.subr.bf16.mxu1 %v3591_v40  ;;  %2435 = vmatprep.subr.bf16.mxu0 %v3719_v44  ;;  %v953_v35 = vld [vmem:[#allocation10 + $0x548] sm:$0xff]  ;;  %v3569_v39 = vcombine.high %v825_v31, %v829_v34  ;;  %v3568_v45 = vcombine.low %v825_v31, %v829_v34 }
 0x17b   :  { %v3697_v40 = vcombine.high %v953_v35, %v957_v36  ;;  %v949_v44 = vld [vmem:[#allocation10 + $0x528] sm:$0xff]  ;;  %v3696_v46 = vcombine.low %v953_v35, %v957_v36 }
 0x17c   :  { %v1037_v22 = vld [vmem:[#allocation10 + $0x7e8] sm:$0xff] }
 0x17d   :  { %2393 = vmatpush2.bf16.msra.mxu1 %v3590_v42  ;;  %2436 = vmatpush2.bf16.msra.mxu0 %v3718_v43  ;;  %v821_v42 = vld [vmem:[#allocation10 + $0x128] sm:$0xff] }
 0x17e   :  { %2448 = vmatprep.subr.bf16.mxu1 %v3585_v48  ;;  %2491 = vmatprep.subr.bf16.mxu0 %v3713_v52  ;;  %v945_v43 = vld [vmem:[#allocation10 + $0x508] sm:$0xff]  ;;  %v3561_v47 = vcombine.high %v817_v41, %v821_v42  ;;  %v3560_v54 = vcombine.low %v817_v41, %v821_v42 }
 0x17f   :  { %v3689_v48 = vcombine.high %v945_v43, %v949_v44  ;;  %v941_v52 = vld [vmem:[#allocation10 + $0x4e8] sm:$0xff] }
 0x180   :  { %v897_v34 = vld [vmem:[#allocation10 + $0x388] sm:$0xff] }
 0x181   :  { %v901_v35 = vld [vmem:[#allocation10 + $0x3a8] sm:$0xff] }
 0x182   :  { %v1025_v36 = vld [vmem:[#allocation10 + $0x788] sm:$0xff] }
 0x183   :  { %v889_v42 = vld [vmem:[#allocation10 + $0x348] sm:$0xff] }
 0x200   :  { %v720_v56 = vpop.f32.mrf.mxu1  ;;  %v763_v57 = vpop.f32.mrf.mxu0 }
 0x201   :  { %v721_v2 = vadd.f32 %v720_v56, %v349_v58  ;;  %v764_v3 = vadd.f32 %v763_v57, %v357_v59  ;;  %v3688_v56 = vcombine.low %v945_v43, %v949_v44  ;;  %v893_v43 = vld [vmem:[#allocation10 + $0x368] sm:$0xff] }
 0x202   :  { %v722_v61 = vpop.f32.mrf.mxu1  ;;  %v765_v63 = vpop.f32.mrf.mxu0  ;;  %v1017_v44 = vld [vmem:[#allocation10 + $0x748] sm:$0xff] }
 0x203   :  { %v723_v6 = vadd.f32 %v722_v61, %v353_v60  ;;  %v766_v7 = vadd.f32 %v765_v63, %v361_v62  ;;  %v929_v61 = vld [vmem:[#allocation10 + $0x488] sm:$0xff] }
 0x204   :  { %v724_v0 = vpop.f32.mrf.mxu1  ;;  %v767_v1 = vpop.f32.mrf.mxu0 }
 0x205   :  { %v725_v4 = vadd.f32 %v724_v0, %v349_v58  ;;  %v768_v5 = vadd.f32 %v767_v1, %v357_v59  ;;  %v801_v59 = vld [vmem:[#allocation10 + $0x88] sm:$0xff] }
 0x206   :  { %v726_v8 = vpop.f32.mrf.mxu1  ;;  %v769_v9 = vpop.f32.mrf.mxu0 }
 0x207   :  { %v772_v10 = vpack.c.bf16 %v725_v4, %v721_v2  ;;  %v774_v11 = vpack.c.bf16 %v768_v5, %v764_v3  ;;  %v727_v12 = vadd.f32 %v726_v8, %v353_v60  ;;  %v770_v13 = vadd.f32 %v769_v9, %v361_v62  ;;  %v805_v60 = vld [vmem:[#allocation10 + $0xa8] sm:$0xff] }
 0x208   :  { %v933_v62 = vld [vmem:[#allocation10 + $0x4a8] sm:$0xff]  ;;  %v3545_v1 = vcombine.high %v801_v59, %v805_v60 }
 0x209   :  { %v773_v14 = vpack.c.bf16 %v727_v12, %v723_v6  ;;  %v775_v15 = vpack.c.bf16 %v770_v13, %v766_v7  ;;  %v776_v16 = vmul.bf16 1045249613, %v772_v10  ;;  %v778_v17 = vmul.bf16 1045249613, %v774_v11  ;;  %v793_v3 = vld [vmem:[#allocation10 + $0x48] sm:$0xff] }
 0x20a   :  { %v3673_v2 = vcombine.high %v929_v61, %v933_v62  ;;  %v797_v4 = vld [vmem:[#allocation10 + $0x68] sm:$0xff]  ;;  %v3544_v7 = vcombine.low %v801_v59, %v805_v60  ;;  %v3672_v8 = vcombine.low %v929_v61, %v933_v62 }
 0x20b   :  { %v777_v18 = vmul.bf16 1045249613, %v773_v14  ;;  %v779_v19 = vmul.bf16 1045249613, %v775_v15  ;;  %v4412_v26 = vmax.bf16 %v776_v16, %v772_v10  ;;  %v4414_v29 = vmax.bf16 %v778_v17, %v774_v11  ;;  %v921_v5 = vld [vmem:[#allocation10 + $0x448] sm:$0xff] }
 0x20c   :  { %v925_v6 = vld [vmem:[#allocation10 + $0x468] sm:$0xff]  ;;  %v3537_v9 = vcombine.high %v793_v3, %v797_v4 }
 0x20d   :  { %v4408_v24 = vmax.bf16 %v777_v18, %v773_v14  ;;  %v4410_v25 = vmax.bf16 %v779_v19, %v775_v15  ;;  %v3665_v10 = vcombine.high %v921_v5, %v925_v6  ;;  %v785_v11 = vld [vmem:[#allocation10 + $0x8] sm:$0xff]  ;;  %v3536_v15 = vcombine.low %v793_v3, %v797_v4 }
 0x20e   :  { %v789_v12 = vld [vmem:[#allocation10 + $0x28] sm:$0xff]  ;;  %v3664_v16 = vcombine.low %v921_v5, %v925_v6 }
 0x20f   :  { %2394 = vmatprep.mubr.bf16.mxu1 %v4408_v24  ;;  %2437 = vmatprep.mubr.bf16.mxu0 %v4410_v25  ;;  %v913_v13 = vld [vmem:[#allocation10 + $0x408] sm:$0xff]  ;;  %v3529_v17 = vcombine.high %v785_v11, %v789_v12  ;;  %v3528_v23 = vcombine.low %v785_v11, %v789_v12 }
 0x210   :  { %2395 = vmatmul.mubr.bf16.vlgmr.msra.gmra.mxu1 %v4412_v26  ;;  %2438 = vmatmul.mubr.bf16.vlgmr.msra.gmra.mxu0 %v4414_v29  ;;  %v917_v14 = vld [vmem:[#allocation10 + $0x428] sm:$0xff] }
 0x211   :  { %2449 = vmatpush1.bf16.msra.mxu1 %v3584_v50  ;;  %2492 = vmatpush1.bf16.msra.mxu0 %v3712_v51  ;;  %v813_v50 = vld [vmem:[#allocation10 + $0xe8] sm:$0xff]  ;;  %v3657_v18 = vcombine.high %v913_v13, %v917_v14  ;;  %v3656_v31 = vcombine.low %v913_v13, %v917_v14 }
 0x212   :  { %2480 = vmatprep.mubr.bf16.mxu1 %v4408_v24  ;;  %2523 = vmatprep.mubr.bf16.mxu0 %v4410_v25  ;;  %v937_v51 = vld [vmem:[#allocation10 + $0x4c8] sm:$0xff]  ;;  %v3553_v57 = vcombine.high %v809_v49, %v813_v50  ;;  %v3552_v63 = vcombine.low %v809_v49, %v813_v50 }
 0x213   :  { %2450 = vmatprep.subr.bf16.mxu1 %v3577_v32  ;;  %2493 = vmatprep.subr.bf16.mxu0 %v3705_v33  ;;  %v3681_v58 = vcombine.high %v937_v51, %v941_v52  ;;  %v3680_v0 = vcombine.low %v937_v51, %v941_v52  ;;  %v905_v19 = vld [vmem:[#allocation10 + $0x3c8] sm:$0xff]  ;;  %v3777_v33 = vcombine.high %v1033_v21, %v1037_v22 }
 0x214   :  { %v3649_v32 = vcombine.high %v905_v19, %v909_v20  ;;  %v881_v50 = vld [vmem:[#allocation10 + $0x308] sm:$0xff] }
 0x215   :  { %2451 = vmatpush1.bf16.msra.mxu1 %v3576_v37  ;;  %2494 = vmatpush1.bf16.msra.mxu0 %v3704_v38  ;;  %v1029_v37 = vld [vmem:[#allocation10 + $0x7a8] sm:$0xff]  ;;  %v3648_v38 = vcombine.low %v905_v19, %v909_v20 }
 0x216   :  { %2452 = vmatprep.subr.bf16.mxu1 %v3569_v39  ;;  %2495 = vmatprep.subr.bf16.mxu0 %v3697_v40  ;;  %v3776_v39 = vcombine.low %v1033_v21, %v1037_v22  ;;  %v3641_v40 = vcombine.high %v897_v34, %v901_v35  ;;  %v3769_v41 = vcombine.high %v1025_v36, %v1029_v37  ;;  %v885_v51 = vld [vmem:[#allocation10 + $0x328] sm:$0xff] }
 0x217   :  { %v1009_v52 = vld [vmem:[#allocation10 + $0x708] sm:$0xff] }
 0x218   :  { %v873_v60 = vld [vmem:[#allocation10 + $0x2c8] sm:$0xff] }
 0x219   :  { %2453 = vmatpush1.bf16.msra.mxu1 %v3568_v45  ;;  %2496 = vmatpush1.bf16.msra.mxu0 %v3696_v46  ;;  %v1021_v45 = vld [vmem:[#allocation10 + $0x768] sm:$0xff]  ;;  %v3640_v46 = vcombine.low %v897_v34, %v901_v35  ;;  %v842_v35 = vld [vmem:[#allocation10 + $0x1d0] sm:$0xff] }
 0x21a   :  { %2454 = vmatprep.subr.bf16.mxu1 %v3561_v47  ;;  %2497 = vmatprep.subr.bf16.mxu0 %v3689_v48  ;;  %v3768_v47 = vcombine.low %v1025_v36, %v1029_v37  ;;  %v3633_v48 = vcombine.high %v889_v42, %v893_v43  ;;  %v3761_v49 = vcombine.high %v1017_v44, %v1021_v45  ;;  %v877_v61 = vld [vmem:[#allocation10 + $0x2e8] sm:$0xff]  ;;  %v846_v36 = vld [vmem:[#allocation10 + $0x1f0] sm:$0xff] }
 0x21b   :  { %v1001_v62 = vld [vmem:[#allocation10 + $0x6c8] sm:$0xff]  ;;  %v970_v37 = vld [vmem:[#allocation10 + $0x5d0] sm:$0xff] }
 0x21c   :  { %v865_v4 = vld [vmem:[#allocation10 + $0x288] sm:$0xff] }
 0x21d   :  { %2455 = vmatpush1.bf16.msra.mxu1 %v3560_v54  ;;  %2498 = vmatpush1.bf16.msra.mxu0 %v3688_v56  ;;  %v1013_v54 = vld [vmem:[#allocation10 + $0x728] sm:$0xff]  ;;  %v3632_v56 = vcombine.low %v889_v42, %v893_v43  ;;  %v834_v43 = vld [vmem:[#allocation10 + $0x190] sm:$0xff] }
 0x21e   :  { %2456 = vmatprep.subr.bf16.mxu1 %v3553_v57  ;;  %2499 = vmatprep.subr.bf16.mxu0 %v3681_v58  ;;  %v3760_v57 = vcombine.low %v1017_v44, %v1021_v45  ;;  %v3625_v58 = vcombine.high %v881_v50, %v885_v51  ;;  %v3753_v59 = vcombine.high %v1009_v52, %v1013_v54  ;;  %v869_v5 = vld [vmem:[#allocation10 + $0x2a8] sm:$0xff]  ;;  %v838_v44 = vld [vmem:[#allocation10 + $0x1b0] sm:$0xff] }
 0x21f   :  { %v993_v6 = vld [vmem:[#allocation10 + $0x688] sm:$0xff]  ;;  %v962_v45 = vld [vmem:[#allocation10 + $0x590] sm:$0xff] }
 0x220   :  { %v857_v12 = vld [vmem:[#allocation10 + $0x248] sm:$0xff] }
 0x221   :  { %2457 = vmatpush1.bf16.msra.mxu1 %v3552_v63  ;;  %2500 = vmatpush1.bf16.msra.mxu0 %v3680_v0  ;;  %v1005_v63 = vld [vmem:[#allocation10 + $0x6e8] sm:$0xff]  ;;  %v3624_v0 = vcombine.low %v881_v50, %v885_v51  ;;  %v826_v51 = vld [vmem:[#allocation10 + $0x150] sm:$0xff] }
 0x222   :  { %2458 = vmatprep.subr.bf16.mxu1 %v3545_v1  ;;  %2501 = vmatprep.subr.bf16.mxu0 %v3673_v2  ;;  %v3752_v1 = vcombine.low %v1009_v52, %v1013_v54  ;;  %v3617_v2 = vcombine.high %v873_v60, %v877_v61  ;;  %v3745_v3 = vcombine.high %v1001_v62, %v1005_v63  ;;  %v861_v13 = vld [vmem:[#allocation10 + $0x268] sm:$0xff]  ;;  %v830_v52 = vld [vmem:[#allocation10 + $0x170] sm:$0xff] }
 0x223   :  { %v985_v14 = vld [vmem:[#allocation10 + $0x648] sm:$0xff]  ;;  %v954_v54 = vld [vmem:[#allocation10 + $0x550] sm:$0xff] }
 0x224   :  { %v849_v20 = vld [vmem:[#allocation10 + $0x208] sm:$0xff] }
 0x225   :  { %2459 = vmatpush1.bf16.msra.mxu1 %v3544_v7  ;;  %2502 = vmatpush1.bf16.msra.mxu0 %v3672_v8  ;;  %v997_v7 = vld [vmem:[#allocation10 + $0x6a8] sm:$0xff]  ;;  %v3616_v8 = vcombine.low %v873_v60, %v877_v61  ;;  %v818_v61 = vld [vmem:[#allocation10 + $0x110] sm:$0xff] }
 0x226   :  { %2460 = vmatprep.subr.bf16.mxu1 %v3537_v9  ;;  %2503 = vmatprep.subr.bf16.mxu0 %v3665_v10  ;;  %v3744_v9 = vcombine.low %v1001_v62, %v1005_v63  ;;  %v3609_v10 = vcombine.high %v865_v4, %v869_v5  ;;  %v3737_v11 = vcombine.high %v993_v6, %v997_v7  ;;  %v853_v21 = vld [vmem:[#allocation10 + $0x228] sm:$0xff]  ;;  %v822_v62 = vld [vmem:[#allocation10 + $0x130] sm:$0xff] }
 0x227   :  { %v977_v22 = vld [vmem:[#allocation10 + $0x608] sm:$0xff]  ;;  %v946_v63 = vld [vmem:[#allocation10 + $0x510] sm:$0xff] }
 0x229   :  { %2461 = vmatpush1.bf16.msra.mxu1 %v3536_v15  ;;  %2504 = vmatpush1.bf16.msra.mxu0 %v3664_v16  ;;  %v989_v15 = vld [vmem:[#allocation10 + $0x668] sm:$0xff]  ;;  %v3608_v16 = vcombine.low %v865_v4, %v869_v5  ;;  %v810_v5 = vld [vmem:[#allocation10 + $0xd0] sm:$0xff] }
 0x22a   :  { %2462 = vmatprep.subr.bf16.mxu1 %v3529_v17  ;;  %2505 = vmatprep.subr.bf16.mxu0 %v3657_v18  ;;  %v3736_v17 = vcombine.low %v993_v6, %v997_v7  ;;  %v3601_v18 = vcombine.high %v857_v12, %v861_v13  ;;  %v3729_v19 = vcombine.high %v985_v14, %v989_v15  ;;  %v814_v6 = vld [vmem:[#allocation10 + $0xf0] sm:$0xff] }
 0x22b   :  { %v938_v7 = vld [vmem:[#allocation10 + $0x4d0] sm:$0xff] }
 0x22d   :  { %2463 = vmatpush1.bf16.msra.mxu1 %v3528_v23  ;;  %2506 = vmatpush1.bf16.msra.mxu0 %v3656_v31  ;;  %v981_v23 = vld [vmem:[#allocation10 + $0x628] sm:$0xff]  ;;  %v3600_v31 = vcombine.low %v857_v12, %v861_v13  ;;  %v802_v13 = vld [vmem:[#allocation10 + $0x90] sm:$0xff] }
 0x22e   :  { %2464 = vmatprep.subr.bf16.mxu1 %v3649_v32  ;;  %2507 = vmatprep.subr.bf16.mxu0 %v3777_v33  ;;  %v3728_v32 = vcombine.low %v985_v14, %v989_v15  ;;  %v3593_v33 = vcombine.high %v849_v20, %v853_v21  ;;  %v3721_v34 = vcombine.high %v977_v22, %v981_v23  ;;  %v806_v14 = vld [vmem:[#allocation10 + $0xb0] sm:$0xff] }
 0x22f   :  { %v930_v15 = vld [vmem:[#allocation10 + $0x490] sm:$0xff] }
 0x231   :  { %2465 = vmatpush2.bf16.msra.mxu1 %v3648_v38  ;;  %2508 = vmatpush2.bf16.msra.mxu0 %v3776_v39  ;;  %v974_v38 = vld [vmem:[#allocation10 + $0x5f0] sm:$0xff]  ;;  %v3592_v39 = vcombine.low %v849_v20, %v853_v21 }
 0x232   :  { %2466 = vmatprep.subr.bf16.mxu1 %v3641_v40  ;;  %2509 = vmatprep.subr.bf16.mxu0 %v3769_v41  ;;  %v3720_v40 = vcombine.low %v977_v22, %v981_v23  ;;  %v3587_v41 = vcombine.high %v842_v35, %v846_v36  ;;  %v3715_v42 = vcombine.high %v970_v37, %v974_v38  ;;  %v794_v21 = vld [vmem:[#allocation10 + $0x50] sm:$0xff] }
 0x233   :  { %v798_v22 = vld [vmem:[#allocation10 + $0x70] sm:$0xff] }
 0x234   :  { %v922_v23 = vld [vmem:[#allocation10 + $0x450] sm:$0xff] }
 0x235   :  { %2467 = vmatpush2.bf16.msra.mxu1 %v3640_v46  ;;  %2510 = vmatpush2.bf16.msra.mxu0 %v3768_v47  ;;  %v966_v46 = vld [vmem:[#allocation10 + $0x5b0] sm:$0xff]  ;;  %v3586_v47 = vcombine.low %v842_v35, %v846_v36 }
 0x236   :  { %2468 = vmatprep.subr.bf16.mxu1 %v3633_v48  ;;  %2511 = vmatprep.subr.bf16.mxu0 %v3761_v49  ;;  %v3714_v48 = vcombine.low %v970_v37, %v974_v38  ;;  %v3579_v49 = vcombine.high %v834_v43, %v838_v44  ;;  %v3707_v50 = vcombine.high %v962_v45, %v966_v46  ;;  %v786_v36 = vld [vmem:[#allocation10 + $0x10] sm:$0xff] }
 0x237   :  { %v790_v37 = vld [vmem:[#allocation10 + $0x30] sm:$0xff] }
 0x238   :  { %v914_v38 = vld [vmem:[#allocation10 + $0x410] sm:$0xff] }
 0x239   :  { %2469 = vmatpush2.bf16.msra.mxu1 %v3632_v56  ;;  %2512 = vmatpush2.bf16.msra.mxu0 %v3760_v57  ;;  %v958_v56 = vld [vmem:[#allocation10 + $0x570] sm:$0xff]  ;;  %v3578_v57 = vcombine.low %v834_v43, %v838_v44 }
 0x23a   :  { %2470 = vmatprep.subr.bf16.mxu1 %v3625_v58  ;;  %2513 = vmatprep.subr.bf16.mxu0 %v3753_v59  ;;  %v3706_v58 = vcombine.low %v962_v45, %v966_v46  ;;  %v3571_v59 = vcombine.high %v826_v51, %v830_v52  ;;  %v3699_v60 = vcombine.high %v954_v54, %v958_v56  ;;  %v906_v44 = vld [vmem:[#allocation10 + $0x3d0] sm:$0xff] }
 0x23b   :  { %v910_v45 = vld [vmem:[#allocation10 + $0x3f0] sm:$0xff] }
 0x23c   :  { %v1034_v46 = vld [vmem:[#allocation10 + $0x7d0] sm:$0xff] }
 0x23d   :  { %2471 = vmatpush2.bf16.msra.mxu1 %v3624_v0  ;;  %2514 = vmatpush2.bf16.msra.mxu0 %v3752_v1  ;;  %v950_v0 = vld [vmem:[#allocation10 + $0x530] sm:$0xff]  ;;  %v3570_v1 = vcombine.low %v826_v51, %v830_v52 }
 0x23e   :  { %2472 = vmatprep.subr.bf16.mxu1 %v3617_v2  ;;  %2515 = vmatprep.subr.bf16.mxu0 %v3745_v3  ;;  %v3698_v2 = vcombine.low %v954_v54, %v958_v56  ;;  %v3563_v3 = vcombine.high %v818_v61, %v822_v62  ;;  %v3691_v4 = vcombine.high %v946_v63, %v950_v0  ;;  %v898_v52 = vld [vmem:[#allocation10 + $0x390] sm:$0xff] }
 0x23f   :  { %v902_v54 = vld [vmem:[#allocation10 + $0x3b0] sm:$0xff] }
 0x240   :  { %v1026_v56 = vld [vmem:[#allocation10 + $0x790] sm:$0xff] }
 0x241   :  { %2473 = vmatpush2.bf16.msra.mxu1 %v3616_v8  ;;  %2516 = vmatpush2.bf16.msra.mxu0 %v3744_v9  ;;  %v942_v8 = vld [vmem:[#allocation10 + $0x4f0] sm:$0xff]  ;;  %v3562_v9 = vcombine.low %v818_v61, %v822_v62 }
 0x242   :  { %2474 = vmatprep.subr.bf16.mxu1 %v3609_v10  ;;  %2517 = vmatprep.subr.bf16.mxu0 %v3737_v11  ;;  %v3690_v10 = vcombine.low %v946_v63, %v950_v0  ;;  %v3555_v11 = vcombine.high %v810_v5, %v814_v6  ;;  %v3683_v12 = vcombine.high %v938_v7, %v942_v8  ;;  %v890_v62 = vld [vmem:[#allocation10 + $0x350] sm:$0xff] }
 0x243   :  { %v894_v63 = vld [vmem:[#allocation10 + $0x370] sm:$0xff] }
 0x244   :  { %v1018_v0 = vld [vmem:[#allocation10 + $0x750] sm:$0xff] }
 0x245   :  { %2475 = vmatpush2.bf16.msra.mxu1 %v3608_v16  ;;  %2518 = vmatpush2.bf16.msra.mxu0 %v3736_v17  ;;  %v934_v16 = vld [vmem:[#allocation10 + $0x4b0] sm:$0xff]  ;;  %v3554_v17 = vcombine.low %v810_v5, %v814_v6 }
 0x246   :  { %2476 = vmatprep.subr.bf16.mxu1 %v3601_v18  ;;  %2519 = vmatprep.subr.bf16.mxu0 %v3729_v19  ;;  %v3682_v18 = vcombine.low %v938_v7, %v942_v8  ;;  %v3547_v19 = vcombine.high %v802_v13, %v806_v14  ;;  %v3675_v20 = vcombine.high %v930_v15, %v934_v16  ;;  %v882_v6 = vld [vmem:[#allocation10 + $0x310] sm:$0xff] }
 0x247   :  { %v886_v7 = vld [vmem:[#allocation10 + $0x330] sm:$0xff] }
 0x248   :  { %v1010_v8 = vld [vmem:[#allocation10 + $0x710] sm:$0xff] }
 0x249   :  { %2477 = vmatpush2.bf16.msra.mxu1 %v3600_v31  ;;  %2520 = vmatpush2.bf16.msra.mxu0 %v3728_v32  ;;  %v926_v31 = vld [vmem:[#allocation10 + $0x470] sm:$0xff]  ;;  %v3546_v32 = vcombine.low %v802_v13, %v806_v14 }
 0x24a   :  { %2478 = vmatprep.subr.bf16.mxu1 %v3593_v33  ;;  %2521 = vmatprep.subr.bf16.mxu0 %v3721_v34  ;;  %v3674_v33 = vcombine.low %v930_v15, %v934_v16  ;;  %v3539_v34 = vcombine.high %v794_v21, %v798_v22  ;;  %v3667_v35 = vcombine.high %v922_v23, %v926_v31  ;;  %v874_v14 = vld [vmem:[#allocation10 + $0x2d0] sm:$0xff] }
 0x24b   :  { %v878_v15 = vld [vmem:[#allocation10 + $0x2f0] sm:$0xff] }
 0x24c   :  { %v1002_v16 = vld [vmem:[#allocation10 + $0x6d0] sm:$0xff] }
 0x24d   :  { %2479 = vmatpush2.bf16.msra.mxu1 %v3592_v39  ;;  %2522 = vmatpush2.bf16.msra.mxu0 %v3720_v40  ;;  %v918_v39 = vld [vmem:[#allocation10 + $0x430] sm:$0xff]  ;;  %v3538_v40 = vcombine.low %v794_v21, %v798_v22 }
 0x24e   :  { %2534 = vmatprep.subr.bf16.mxu1 %v3587_v41  ;;  %2577 = vmatprep.subr.bf16.mxu0 %v3715_v42  ;;  %v3666_v41 = vcombine.low %v922_v23, %v926_v31  ;;  %v3531_v42 = vcombine.high %v786_v36, %v790_v37  ;;  %v3659_v43 = vcombine.high %v914_v38, %v918_v39  ;;  %v866_v22 = vld [vmem:[#allocation10 + $0x290] sm:$0xff] }
 0x24f   :  { %v870_v23 = vld [vmem:[#allocation10 + $0x2b0] sm:$0xff] }
 0x250   :  { %2481 = vmatmul.mubr.bf16.vlgmr.msra.gmra.mxu1 %v4412_v26  ;;  %2524 = vmatmul.mubr.bf16.vlgmr.msra.gmra.mxu0 %v4414_v29  ;;  %v994_v31 = vld [vmem:[#allocation10 + $0x690] sm:$0xff] }
 0x251   :  { %2535 = vmatpush1.bf16.msra.mxu1 %v3586_v47  ;;  %2566 = vmatprep.mubr.bf16.mxu1 %v4408_v24  ;;  %v1038_v47 = vld [vmem:[#allocation10 + $0x7f0] sm:$0xff] }
 0x252   :  { %2578 = vmatpush1.bf16.msra.mxu0 %v3714_v48  ;;  %2609 = vmatprep.mubr.bf16.mxu0 %v4410_v25  ;;  %v3530_v48 = vcombine.low %v786_v36, %v790_v37  ;;  %v3779_v51 = vcombine.high %v1034_v46, %v1038_v47  ;;  %v858_v37 = vld [vmem:[#allocation10 + $0x250] sm:$0xff] }
 0x253   :  { %2536 = vmatprep.subr.bf16.mxu1 %v3579_v49  ;;  %2579 = vmatprep.subr.bf16.mxu0 %v3707_v50  ;;  %v3658_v49 = vcombine.low %v914_v38, %v918_v39  ;;  %v3651_v50 = vcombine.high %v906_v44, %v910_v45  ;;  %v862_v38 = vld [vmem:[#allocation10 + $0x270] sm:$0xff] }
 0x254   :  { %v986_v39 = vld [vmem:[#allocation10 + $0x650] sm:$0xff] }
 0x255   :  { %2537 = vmatpush1.bf16.msra.mxu1 %v3578_v57  ;;  %v1030_v57 = vld [vmem:[#allocation10 + $0x7b0] sm:$0xff] }
 0x256   :  { %2580 = vmatpush1.bf16.msra.mxu0 %v3706_v58  ;;  %2538 = vmatprep.subr.bf16.mxu1 %v3571_v59  ;;  %v3650_v58 = vcombine.low %v906_v44, %v910_v45  ;;  %v3778_v59 = vcombine.low %v1034_v46, %v1038_v47  ;;  %v3771_v61 = vcombine.high %v1026_v56, %v1030_v57  ;;  %v850_v45 = vld [vmem:[#allocation10 + $0x210] sm:$0xff] }
 0x257   :  { %2581 = vmatprep.subr.bf16.mxu0 %v3699_v60  ;;  %v3643_v60 = vcombine.high %v898_v52, %v902_v54  ;;  %v854_v46 = vld [vmem:[#allocation10 + $0x230] sm:$0xff] }
 0x258   :  { %v978_v47 = vld [vmem:[#allocation10 + $0x610] sm:$0xff] }
 0x259   :  { %2539 = vmatpush1.bf16.msra.mxu1 %v3570_v1  ;;  %v1022_v1 = vld [vmem:[#allocation10 + $0x770] sm:$0xff] }
 0x25a   :  { %2582 = vmatpush1.bf16.msra.mxu0 %v3698_v2  ;;  %2540 = vmatprep.subr.bf16.mxu1 %v3563_v3  ;;  %v3642_v2 = vcombine.low %v898_v52, %v902_v54  ;;  %v3770_v3 = vcombine.low %v1026_v56, %v1030_v57  ;;  %v3763_v5 = vcombine.high %v1018_v0, %v1022_v1  ;;  %v843_v54 = vld [vmem:[#allocation10 + $0x1d8] sm:$0xff] }
 0x25b   :  { %2583 = vmatprep.subr.bf16.mxu0 %v3691_v4  ;;  %v3635_v4 = vcombine.high %v890_v62, %v894_v63  ;;  %v847_v56 = vld [vmem:[#allocation10 + $0x1f8] sm:$0xff] }
 0x25c   :  { %v971_v57 = vld [vmem:[#allocation10 + $0x5d8] sm:$0xff] }
 0x25d   :  { %2541 = vmatpush1.bf16.msra.mxu1 %v3562_v9  ;;  %v1014_v9 = vld [vmem:[#allocation10 + $0x730] sm:$0xff] }
 0x25e   :  { %2584 = vmatpush1.bf16.msra.mxu0 %v3690_v10  ;;  %2542 = vmatprep.subr.bf16.mxu1 %v3555_v11  ;;  %v3634_v10 = vcombine.low %v890_v62, %v894_v63  ;;  %v3762_v11 = vcombine.low %v1018_v0, %v1022_v1  ;;  %v3755_v13 = vcombine.high %v1010_v8, %v1014_v9  ;;  %v835_v63 = vld [vmem:[#allocation10 + $0x198] sm:$0xff] }
 0x25f   :  { %2585 = vmatprep.subr.bf16.mxu0 %v3683_v12  ;;  %v3627_v12 = vcombine.high %v882_v6, %v886_v7  ;;  %v839_v0 = vld [vmem:[#allocation10 + $0x1b8] sm:$0xff]  ;;  %v3588_v1 = vcombine.low %v843_v54, %v847_v56 }
 0x261   :  { %2543 = vmatpush1.bf16.msra.mxu1 %v3554_v17  ;;  %v1006_v17 = vld [vmem:[#allocation10 + $0x6f0] sm:$0xff] }
 0x262   :  { %2586 = vmatpush1.bf16.msra.mxu0 %v3682_v18  ;;  %2544 = vmatprep.subr.bf16.mxu1 %v3547_v19  ;;  %v3626_v18 = vcombine.low %v882_v6, %v886_v7  ;;  %v3754_v19 = vcombine.low %v1010_v8, %v1014_v9  ;;  %v3747_v21 = vcombine.high %v1002_v16, %v1006_v17  ;;  %v827_v6 = vld [vmem:[#allocation10 + $0x158] sm:$0xff] }
 0x263   :  { %2587 = vmatprep.subr.bf16.mxu0 %v3675_v20  ;;  %v3619_v20 = vcombine.high %v874_v14, %v878_v15  ;;  %v831_v7 = vld [vmem:[#allocation10 + $0x178] sm:$0xff] }
 0x264   :  { %v955_v9 = vld [vmem:[#allocation10 + $0x558] sm:$0xff] }
 0x265   :  { %2545 = vmatpush1.bf16.msra.mxu1 %v3546_v32  ;;  %v998_v32 = vld [vmem:[#allocation10 + $0x6b0] sm:$0xff] }
 0x266   :  { %2588 = vmatpush1.bf16.msra.mxu0 %v3674_v33  ;;  %2546 = vmatprep.subr.bf16.mxu1 %v3539_v34  ;;  %v3618_v33 = vcombine.low %v874_v14, %v878_v15  ;;  %v3746_v34 = vcombine.low %v1002_v16, %v1006_v17  ;;  %v3739_v36 = vcombine.high %v994_v31, %v998_v32  ;;  %v819_v15 = vld [vmem:[#allocation10 + $0x118] sm:$0xff] }
 0x267   :  { %2589 = vmatprep.subr.bf16.mxu0 %v3667_v35  ;;  %v3611_v35 = vcombine.high %v866_v22, %v870_v23  ;;  %v823_v16 = vld [vmem:[#allocation10 + $0x138] sm:$0xff] }
 0x268   :  { %v947_v17 = vld [vmem:[#allocation10 + $0x518] sm:$0xff] }
 0x269   :  { %2547 = vmatpush1.bf16.msra.mxu1 %v3538_v40  ;;  %v990_v40 = vld [vmem:[#allocation10 + $0x670] sm:$0xff] }
 0x26a   :  { %2590 = vmatpush1.bf16.msra.mxu0 %v3666_v41  ;;  %2548 = vmatprep.subr.bf16.mxu1 %v3531_v42  ;;  %v3610_v41 = vcombine.low %v866_v22, %v870_v23  ;;  %v3738_v42 = vcombine.low %v994_v31, %v998_v32  ;;  %v3731_v44 = vcombine.high %v986_v39, %v990_v40  ;;  %v811_v22 = vld [vmem:[#allocation10 + $0xd8] sm:$0xff] }
 0x26b   :  { %2591 = vmatprep.subr.bf16.mxu0 %v3659_v43  ;;  %v3603_v43 = vcombine.high %v858_v37, %v862_v38  ;;  %v815_v23 = vld [vmem:[#allocation10 + $0xf8] sm:$0xff] }
 0x26c   :  { %v939_v31 = vld [vmem:[#allocation10 + $0x4d8] sm:$0xff] }
 0x26d   :  { %2549 = vmatpush1.bf16.msra.mxu1 %v3530_v48  ;;  %v982_v48 = vld [vmem:[#allocation10 + $0x630] sm:$0xff]  ;;  %v943_v32 = vld [vmem:[#allocation10 + $0x4f8] sm:$0xff] }
 0x26e   :  { %2592 = vmatpush1.bf16.msra.mxu0 %v3658_v49  ;;  %2550 = vmatprep.subr.bf16.mxu1 %v3651_v50  ;;  %v3602_v49 = vcombine.low %v858_v37, %v862_v38  ;;  %v3730_v50 = vcombine.low %v986_v39, %v990_v40  ;;  %v3723_v52 = vcombine.high %v978_v47, %v982_v48  ;;  %v807_v37 = vld [vmem:[#allocation10 + $0xb8] sm:$0xff] }
 0x26f   :  { %2593 = vmatprep.subr.bf16.mxu0 %v3779_v51  ;;  %v3595_v51 = vcombine.high %v850_v45, %v854_v46  ;;  %v931_v38 = vld [vmem:[#allocation10 + $0x498] sm:$0xff]  ;;  %v3556_v40 = vcombine.low %v811_v22, %v815_v23 }
 0x270   :  { %v935_v39 = vld [vmem:[#allocation10 + $0x4b8] sm:$0xff] }
 0x271   :  { %2551 = vmatpush2.bf16.msra.mxu1 %v3650_v58  ;;  %v975_v58 = vld [vmem:[#allocation10 + $0x5f8] sm:$0xff] }
 0x272   :  { %2594 = vmatpush2.bf16.msra.mxu0 %v3778_v59  ;;  %2552 = vmatprep.subr.bf16.mxu1 %v3643_v60  ;;  %v3594_v59 = vcombine.low %v850_v45, %v854_v46  ;;  %v3722_v60 = vcombine.low %v978_v47, %v982_v48  ;;  %v3717_v62 = vcombine.high %v971_v57, %v975_v58  ;;  %v799_v45 = vld [vmem:[#allocation10 + $0x78] sm:$0xff] }
 0x273   :  { %2595 = vmatprep.subr.bf16.mxu0 %v3771_v61  ;;  %v3589_v61 = vcombine.high %v843_v54, %v847_v56  ;;  %v923_v46 = vld [vmem:[#allocation10 + $0x458] sm:$0xff] }
 0x274   :  { %v927_v47 = vld [vmem:[#allocation10 + $0x478] sm:$0xff] }
 0x275   :  { %2553 = vmatpush2.bf16.msra.mxu1 %v3642_v2  ;;  %v963_v2 = vld [vmem:[#allocation10 + $0x598] sm:$0xff] }
 0x276   :  { %2596 = vmatpush2.bf16.msra.mxu0 %v3770_v3  ;;  %2554 = vmatprep.subr.bf16.mxu1 %v3635_v4  ;;  %v967_v3 = vld [vmem:[#allocation10 + $0x5b8] sm:$0xff]  ;;  %v3716_v4 = vcombine.low %v971_v57, %v975_v58 }
 0x277   :  { %2597 = vmatprep.subr.bf16.mxu0 %v3763_v5  ;;  %v3581_v5 = vcombine.high %v835_v63, %v839_v0  ;;  %v3709_v8 = vcombine.high %v963_v2, %v967_v3  ;;  %v791_v54 = vld [vmem:[#allocation10 + $0x38] sm:$0xff] }
 0x278   :  { %v915_v56 = vld [vmem:[#allocation10 + $0x418] sm:$0xff] }
 0x279   :  { %2555 = vmatpush2.bf16.msra.mxu1 %v3634_v10  ;;  %v959_v10 = vld [vmem:[#allocation10 + $0x578] sm:$0xff] }
 0x27a   :  { %2598 = vmatpush2.bf16.msra.mxu0 %v3762_v11  ;;  %2556 = vmatprep.subr.bf16.mxu1 %v3627_v12  ;;  %v3580_v11 = vcombine.low %v835_v63, %v839_v0  ;;  %v3708_v12 = vcombine.low %v963_v2, %v967_v3  ;;  %v3701_v14 = vcombine.high %v955_v9, %v959_v10  ;;  %v919_v57 = vld [vmem:[#allocation10 + $0x438] sm:$0xff] }
 0x27b   :  { %2599 = vmatprep.subr.bf16.mxu0 %v3755_v13  ;;  %v3573_v13 = vcombine.high %v827_v6, %v831_v7  ;;  %v911_v63 = vld [vmem:[#allocation10 + $0x3f8] sm:$0xff]  ;;  %v3660_v3 = vcombine.low %v915_v56, %v919_v57 }
 0x27c   :  { %v1035_v0 = vld [vmem:[#allocation10 + $0x7d8] sm:$0xff] }
 0x27d   :  { %2557 = vmatpush2.bf16.msra.mxu1 %v3626_v18  ;;  %v951_v18 = vld [vmem:[#allocation10 + $0x538] sm:$0xff] }
 0x27e   :  { %2600 = vmatpush2.bf16.msra.mxu0 %v3754_v19  ;;  %2558 = vmatprep.subr.bf16.mxu1 %v3619_v20  ;;  %v3572_v19 = vcombine.low %v827_v6, %v831_v7  ;;  %v3700_v20 = vcombine.low %v955_v9, %v959_v10  ;;  %v899_v6 = vld [vmem:[#allocation10 + $0x398] sm:$0xff] }
 0x27f   :  { %2601 = vmatprep.subr.bf16.mxu0 %v3747_v21  ;;  %v3565_v21 = vcombine.high %v819_v15, %v823_v16  ;;  %v903_v7 = vld [vmem:[#allocation10 + $0x3b8] sm:$0xff] }
 0x280   :  { %v1031_v9 = vld [vmem:[#allocation10 + $0x7b8] sm:$0xff] }
 0x281   :  { %2559 = vmatpush2.bf16.msra.mxu1 %v3618_v33  ;;  %v3692_v33 = vcombine.low %v947_v17, %v951_v18 }
 0x282   :  { %2602 = vmatpush2.bf16.msra.mxu0 %v3746_v34  ;;  %2560 = vmatprep.subr.bf16.mxu1 %v3611_v35  ;;  %v3557_v34 = vcombine.high %v811_v22, %v815_v23  ;;  %v3685_v35 = vcombine.high %v939_v31, %v943_v32  ;;  %v887_v22 = vld [vmem:[#allocation10 + $0x338] sm:$0xff] }
 0x283   :  { %2603 = vmatprep.subr.bf16.mxu0 %v3739_v36  ;;  %v803_v36 = vld [vmem:[#allocation10 + $0x98] sm:$0xff] }
 0x284   :  { %v3548_v48 = vcombine.low %v803_v36, %v807_v37  ;;  %v1011_v23 = vld [vmem:[#allocation10 + $0x718] sm:$0xff] }
 0x285   :  { %2561 = vmatpush2.bf16.msra.mxu1 %v3610_v41  ;;  %v3684_v41 = vcombine.low %v939_v31, %v943_v32  ;;  %v1015_v31 = vld [vmem:[#allocation10 + $0x738] sm:$0xff] }
 0x286   :  { %2604 = vmatpush2.bf16.msra.mxu0 %v3738_v42  ;;  %2562 = vmatprep.subr.bf16.mxu1 %v3603_v43  ;;  %v3549_v42 = vcombine.high %v803_v36, %v807_v37  ;;  %v3677_v43 = vcombine.high %v931_v38, %v935_v39  ;;  %v879_v36 = vld [vmem:[#allocation10 + $0x2f8] sm:$0xff] }
 0x287   :  { %2605 = vmatprep.subr.bf16.mxu0 %v3731_v44  ;;  %v795_v44 = vld [vmem:[#allocation10 + $0x58] sm:$0xff] }
 0x288   :  { %v3540_v58 = vcombine.low %v795_v44, %v799_v45  ;;  %v1003_v37 = vld [vmem:[#allocation10 + $0x6d8] sm:$0xff] }
 0x289   :  { %2563 = vmatpush2.bf16.msra.mxu1 %v3602_v49  ;;  %v3676_v49 = vcombine.low %v931_v38, %v935_v39  ;;  %v1007_v38 = vld [vmem:[#allocation10 + $0x6f8] sm:$0xff] }
 0x28a   :  { %2606 = vmatpush2.bf16.msra.mxu0 %v3730_v50  ;;  %2564 = vmatprep.subr.bf16.mxu1 %v3595_v51  ;;  %v3541_v50 = vcombine.high %v795_v44, %v799_v45  ;;  %v3669_v51 = vcombine.high %v923_v46, %v927_v47  ;;  %v871_v44 = vld [vmem:[#allocation10 + $0x2b8] sm:$0xff] }
 0x28b   :  { %2607 = vmatprep.subr.bf16.mxu0 %v3723_v52  ;;  %v787_v52 = vld [vmem:[#allocation10 + $0x18] sm:$0xff] }
 0x28c   :  { %v3532_v2 = vcombine.low %v787_v52, %v791_v54  ;;  %v995_v45 = vld [vmem:[#allocation10 + $0x698] sm:$0xff] }
 0x28d   :  { %2565 = vmatpush2.bf16.msra.mxu1 %v3594_v59  ;;  %v3668_v59 = vcombine.low %v923_v46, %v927_v47  ;;  %v999_v46 = vld [vmem:[#allocation10 + $0x6b8] sm:$0xff] }
 0x28e   :  { %2608 = vmatpush2.bf16.msra.mxu0 %v3722_v60  ;;  %2620 = vmatprep.subr.bf16.mxu1 %v3589_v61  ;;  %v3533_v60 = vcombine.high %v787_v52, %v791_v54  ;;  %v3661_v61 = vcombine.high %v915_v56, %v919_v57  ;;  %v863_v52 = vld [vmem:[#allocation10 + $0x278] sm:$0xff] }
 0x28f   :  { %2663 = vmatprep.subr.bf16.mxu0 %v3717_v62  ;;  %v907_v62 = vld [vmem:[#allocation10 + $0x3d8] sm:$0xff] }
 0x290   :  { %2567 = vmatmul.mubr.bf16.vlgmr.msra.gmra.mxu1 %v4412_v26  ;;  %v3652_v10 = vcombine.low %v907_v62, %v911_v63  ;;  %v987_v54 = vld [vmem:[#allocation10 + $0x658] sm:$0xff] }
 0x291   :  { %2610 = vmatmul.mubr.bf16.vlgmr.msra.gmra.mxu0 %v4414_v29  ;;  %2621 = vmatpush1.bf16.msra.mxu1 %v3588_v1  ;;  %v1039_v1 = vld [vmem:[#allocation10 + $0x7f8] sm:$0xff] }
 0x292   :  { %2652 = vmatprep.mubr.bf16.mxu1 %v4408_v24  ;;  %2664 = vmatpush1.bf16.msra.mxu0 %v3716_v4  ;;  %v3693_v24 = vcombine.high %v947_v17, %v951_v18  ;;  %v3653_v4 = vcombine.high %v907_v62, %v911_v63  ;;  %v1023_v17 = vld [vmem:[#allocation10 + $0x778] sm:$0xff]  ;;  %v3644_v18 = vcombine.low %v899_v6, %v903_v7 }
 0x293   :  { %2695 = vmatprep.mubr.bf16.mxu0 %v4410_v25  ;;  %2622 = vmatprep.subr.bf16.mxu1 %v3581_v5  ;;  %v3564_v25 = vcombine.low %v819_v15, %v823_v16  ;;  %v3781_v5 = vcombine.high %v1035_v0, %v1039_v1  ;;  %v895_v15 = vld [vmem:[#allocation10 + $0x378] sm:$0xff] }
 0x294   :  { %2665 = vmatprep.subr.bf16.mxu0 %v3709_v8  ;;  %v1027_v8 = vld [vmem:[#allocation10 + $0x798] sm:$0xff] }
 0x295   :  { %2623 = vmatpush1.bf16.msra.mxu1 %v3580_v11  ;;  %v3780_v11 = vcombine.low %v1035_v0, %v1039_v1  ;;  %v1019_v16 = vld [vmem:[#allocation10 + $0x758] sm:$0xff] }
 0x296   :  { %2666 = vmatpush1.bf16.msra.mxu0 %v3708_v12  ;;  %2624 = vmatprep.subr.bf16.mxu1 %v3573_v13  ;;  %v3645_v12 = vcombine.high %v899_v6, %v903_v7  ;;  %v3773_v13 = vcombine.high %v1027_v8, %v1031_v9  ;;  %v991_v56 = vld [vmem:[#allocation10 + $0x678] sm:$0xff] }
 0x297   :  { %2667 = vmatprep.subr.bf16.mxu0 %v3701_v14  ;;  %v891_v14 = vld [vmem:[#allocation10 + $0x358] sm:$0xff] }
 0x298   :  { %v3636_v32 = vcombine.low %v891_v14, %v895_v15  ;;  %v855_v62 = vld [vmem:[#allocation10 + $0x238] sm:$0xff] }
 0x299   :  { %2625 = vmatpush1.bf16.msra.mxu1 %v3572_v19  ;;  %v3772_v19 = vcombine.low %v1027_v8, %v1031_v9  ;;  %v979_v63 = vld [vmem:[#allocation10 + $0x618] sm:$0xff] }
 0x29a   :  { %2668 = vmatpush1.bf16.msra.mxu0 %v3700_v20  ;;  %2626 = vmatprep.subr.bf16.mxu1 %v3565_v21  ;;  %v3637_v20 = vcombine.high %v891_v14, %v895_v15  ;;  %v3765_v21 = vcombine.high %v1019_v16, %v1023_v17  ;;  %v983_v0 = vld [vmem:[#allocation10 + $0x638] sm:$0xff] }
 0x29b   :  { %2669 = vmatprep.subr.bf16.mxu0 %v3693_v24  ;;  %v883_v24 = vld [vmem:[#allocation10 + $0x318] sm:$0xff]  ;;  %v3724_v6 = vcombine.low %v979_v63, %v983_v0 }
 0x29c   :  { %v3628_v39 = vcombine.low %v883_v24, %v887_v22  ;;  %v4072_v7 = vld [vmem:[#allocation11 + $0x78] sm:$0xff]  }
 0x29d   :  { %2627 = vmatpush1.bf16.msra.mxu1 %v3564_v25  ;;  %v3764_v25 = vcombine.low %v1019_v16, %v1023_v17  ;;  %v4088_v8 = vld [vmem:[#allocation11 + $0xf8] sm:$0xff]   ;;  %v4075_v17 = vld [vmem:[#allocation11 + $0x30] sm:$0xff]  }
 0x29e   :  { %2670 = vmatpush1.bf16.msra.mxu0 %v3692_v33  ;;  %2628 = vmatprep.subr.bf16.mxu1 %v3557_v34  ;;  %v3629_v33 = vcombine.high %v883_v24, %v887_v22  ;;  %v3757_v34 = vcombine.high %v1011_v23, %v1015_v31  ;;  %v4073_v9 = vld [vmem:[#allocation11 + $0x38] sm:$0xff]  }
 0x29f   :  { %2671 = vmatprep.subr.bf16.mxu0 %v3685_v35  ;;  %v875_v35 = vld [vmem:[#allocation10 + $0x2d8] sm:$0xff] }
 0x2a0   :  { %v3620_v47 = vcombine.low %v875_v35, %v879_v36 }
 0x2a1   :  { %2629 = vmatpush1.bf16.msra.mxu1 %v3556_v40  ;;  %v3756_v40 = vcombine.low %v1011_v23, %v1015_v31  ;;  %v4077_v31 = vld [vmem:[#allocation11 + $0x28] sm:$0xff]  }
 0x2a2   :  { %2672 = vmatpush1.bf16.msra.mxu0 %v3684_v41  ;;  %2630 = vmatprep.subr.bf16.mxu1 %v3549_v42  ;;  %v3621_v41 = vcombine.high %v875_v35, %v879_v36  ;;  %v3749_v42 = vcombine.high %v1003_v37, %v1007_v38 }
 0x2a3   :  { %2673 = vmatprep.subr.bf16.mxu0 %v3677_v43  ;;  %v867_v43 = vld [vmem:[#allocation10 + $0x298] sm:$0xff] }
 0x2a4   :  { %v3612_v57 = vcombine.low %v867_v43, %v871_v44 }
 0x2a5   :  { %2631 = vmatpush1.bf16.msra.mxu1 %v3548_v48  ;;  %v3748_v48 = vcombine.low %v1003_v37, %v1007_v38  ;;  %v4079_v37 = vld [vmem:[#allocation11 + $0x20] sm:$0xff]   ;;  %v4080_v38 = vld [vmem:[#allocation11 + $0x58] sm:$0xff]  }
 0x2a6   :  { %2674 = vmatpush1.bf16.msra.mxu0 %v3676_v49  ;;  %2632 = vmatprep.subr.bf16.mxu1 %v3541_v50  ;;  %v3613_v49 = vcombine.high %v867_v43, %v871_v44  ;;  %v3741_v50 = vcombine.high %v995_v45, %v999_v46  ;;  %v4081_v44 = vld [vmem:[#allocation11 + $0x18] sm:$0xff]  }
 0x2a7   :  { %2675 = vmatprep.subr.bf16.mxu0 %v3669_v51  ;;  %v859_v51 = vld [vmem:[#allocation10 + $0x258] sm:$0xff] }
 0x2a8   :  { %v3604_v1 = vcombine.low %v859_v51, %v863_v52 }
 0x2a9   :  { %2633 = vmatpush1.bf16.msra.mxu1 %v3540_v58  ;;  %v3740_v58 = vcombine.low %v995_v45, %v999_v46  ;;  %v4082_v46 = vld [vmem:[#allocation11 + $0x50] sm:$0xff]  }
 0x2aa   :  { %2676 = vmatpush1.bf16.msra.mxu0 %v3668_v59  ;;  %2634 = vmatprep.subr.bf16.mxu1 %v3533_v60  ;;  %v3605_v59 = vcombine.high %v859_v51, %v863_v52  ;;  %v3733_v60 = vcombine.high %v987_v54, %v991_v56  ;;  %v4083_v51 = vld [vmem:[#allocation11 + $0x10] sm:$0xff]  }
 0x2ab   :  { %2677 = vmatprep.subr.bf16.mxu0 %v3661_v61  ;;  %v851_v61 = vld [vmem:[#allocation10 + $0x218] sm:$0xff] }
 0x2ad   :  { %2635 = vmatpush1.bf16.msra.mxu1 %v3532_v2  ;;  %v3732_v2 = vcombine.low %v987_v54, %v991_v56  ;;  %v4084_v54 = vld [vmem:[#allocation11 + $0x48] sm:$0xff]  }
 0x2ae   :  { %2678 = vmatpush1.bf16.msra.mxu0 %v3660_v3  ;;  %2636 = vmatprep.subr.bf16.mxu1 %v3653_v4  ;;  %v3597_v3 = vcombine.high %v851_v61, %v855_v62  ;;  %v3725_v4 = vcombine.high %v979_v63, %v983_v0  ;;  %v4100_v56 = vld [vmem:[#allocation11 + $0xc8] sm:$0xff]   ;;  %v4087_v63 = vld [vmem:[#allocation11] sm:$0xff]  }
 0x2af   :  { %2679 = vmatprep.subr.bf16.mxu0 %v3781_v5  ;;  %v3596_v5 = vcombine.low %v851_v61, %v855_v62  ;;  %v4101_v61 = vld [vmem:[#allocation11 + $0x88] sm:$0xff]   ;;  %v4102_v62 = vld [vmem:[#allocation11 + $0xc0] sm:$0xff]  }
 0x2b1   :  { %2637 = vmatpush2.bf16.msra.mxu1 %v3652_v10  ;;  %v4074_v10 = vld [vmem:[#allocation11 + $0x70] sm:$0xff]  }
 0x2b2   :  { %2680 = vmatpush2.bf16.msra.mxu0 %v3780_v11  ;;  %2638 = vmatprep.subr.bf16.mxu1 %v3645_v12  ;;  %v4089_v11 = vld [vmem:[#allocation11 + $0xb8] sm:$0xff]   ;;  %v4090_v12 = vld [vmem:[#allocation11 + $0xf0] sm:$0xff]  }
 0x2b3   :  { %2681 = vmatprep.subr.bf16.mxu0 %v3773_v13  ;;  %v4434_v13 = vld [vmem:[%s4470_s6] sm:$0xff] }
 0x2b4   :  { %v1049_v16 = vrot.slane %v4434_v13, %v4396_v30 }
 0x2b5   :  { %2639 = vmatpush2.bf16.msra.mxu1 %v3644_v18 }
 0x2b6   :  { %2682 = vmatpush2.bf16.msra.mxu0 %v3772_v19  ;;  %2640 = vmatprep.subr.bf16.mxu1 %v3637_v20  ;;  %v4076_v20 = vld [vmem:[#allocation11 + $0x68] sm:$0xff]  }
 0x2b7   :  { %2683 = vmatprep.subr.bf16.mxu0 %v3765_v21  ;;  %v4092_v21 = vld [vmem:[#allocation11 + $0xe8] sm:$0xff]  }
 0x2b9   :  { %2641 = vmatpush2.bf16.msra.mxu1 %v3636_v32 }
 0x2ba   :  { %2684 = vmatpush2.bf16.msra.mxu0 %v3764_v25  ;;  %2642 = vmatprep.subr.bf16.mxu1 %v3629_v33  ;;  %v4093_v25 = vld [vmem:[#allocation11 + $0xa8] sm:$0xff]   ;;  %v4094_v33 = vld [vmem:[#allocation11 + $0xe0] sm:$0xff]  }
 0x2bb   :  { %2685 = vmatprep.subr.bf16.mxu0 %v3757_v34 }
 0x2bd   :  { %2643 = vmatpush2.bf16.msra.mxu1 %v3628_v39  ;;  %v4095_v39 = vld [vmem:[#allocation11 + $0xa0] sm:$0xff]  }
 0x2be   :  { %2686 = vmatpush2.bf16.msra.mxu0 %v3756_v40  ;;  %2644 = vmatprep.subr.bf16.mxu1 %v3621_v41  ;;  %v4096_v41 = vld [vmem:[#allocation11 + $0xd8] sm:$0xff]  }
 0x2bf   :  { %2687 = vmatprep.subr.bf16.mxu0 %v3749_v42  ;;  %v1045_v42 = vrot.slane %v4434_v13, %v4390_v28  ;;  %v4099_v28 = vld [vmem:[#allocation11 + $0x90] sm:$0xff]  }
 0x2c1   :  { %2645 = vmatpush2.bf16.msra.mxu1 %v3620_v47  ;;  %v4097_v47 = vld [vmem:[#allocation11 + $0x98] sm:$0xff]  }
 0x2c2   :  { %2688 = vmatpush2.bf16.msra.mxu0 %v3748_v48  ;;  %2646 = vmatprep.subr.bf16.mxu1 %v3613_v49  ;;  %v4098_v49 = vld [vmem:[#allocation11 + $0xd0] sm:$0xff]  }
 0x2c3   :  { %2689 = vmatprep.subr.bf16.mxu0 %v3741_v50 }
 0x2c5   :  { %2647 = vmatpush2.bf16.msra.mxu1 %v3612_v57 }
 0x2c6   :  { %2690 = vmatpush2.bf16.msra.mxu0 %v3740_v58  ;;  %2648 = vmatprep.subr.bf16.mxu1 %v3605_v59  ;;  %v4085_v58 = vld [vmem:[#allocation11 + $0x8] sm:$0xff]  }
 0x2c7   :  { %2691 = vmatprep.subr.bf16.mxu0 %v3733_v60  ;;  %v4086_v60 = vld [vmem:[#allocation11 + $0x40] sm:$0xff]  }
 0x2c9   :  { %2649 = vmatpush2.bf16.msra.mxu1 %v3604_v1  ;;  %v4103_v1 = vld [vmem:[#allocation11 + $0x80] sm:$0xff]  }
 0x2ca   :  { %2692 = vmatpush2.bf16.msra.mxu0 %v3732_v2  ;;  %2650 = vmatprep.subr.bf16.mxu1 %v3597_v3  ;;  %v4104_v2 = vld [vmem:[#allocation11 + $0x178] sm:$0xff]  }
 0x2cb   :  { %2693 = vmatprep.subr.bf16.mxu0 %v3725_v4  ;;  %v4120_v3 = vld [vmem:[#allocation11 + $0x1f8] sm:$0xff]  }
 0x2cc   :  { %v4105_v4 = vld [vmem:[#allocation11 + $0x138] sm:$0xff]  }
 0x2cd   :  { %2651 = vmatpush2.bf16.msra.mxu1 %v3596_v5 }
 0x2ce   :  { %2694 = vmatpush2.bf16.msra.mxu0 %v3724_v6  ;;  %3847 = vmatprep.subr.bf16.mxu1 %v4072_v7  ;;  %v4106_v6 = vld [vmem:[#allocation11 + $0x170] sm:$0xff]  }
 0x2cf   :  { %3869 = vmatprep.subr.bf16.mxu0 %v4088_v8  ;;  %v4107_v7 = vld [vmem:[#allocation11 + $0x130] sm:$0xff]   ;;  %v4108_v8 = vld [vmem:[#allocation11 + $0x168] sm:$0xff]  }
 0x2d0   :  { %2653 = vmatmul.mubr.bf16.vlgmr.msra.gmra.mxu1 %v4412_v26  ;;  %v2396_v14 = vpop.f32.mrf.mxu1  ;;  %v2439_v15 = vpop.f32.mrf.mxu0  ;;  %v4091_v26 = vld [vmem:[#allocation11 + $0xb0] sm:$0xff]  }
 0x2d1   :  { %2696 = vmatmul.mubr.bf16.vlgmr.msra.gmra.mxu0 %v4414_v29  ;;  %3848 = vmatpush3.bf16.msra.mxu1 %v4073_v9  ;;  %v4078_v29 = vld [vmem:[#allocation11 + $0x60] sm:$0xff]   ;;  %v2397_v50 = vadd.f32 %v2396_v14, %v1045_v42  ;;  %v4109_v9 = vld [vmem:[#allocation11 + $0x128] sm:$0xff]   ;;  %v4113_v14 = vld [vmem:[#allocation11 + $0x118] sm:$0xff]  }
 0x2d2   :  { %v2398_v18 = vpop.f32.mrf.mxu1  ;;  %v2441_v19 = vpop.f32.mrf.mxu0  ;;  %3849 = vmatprep.subr.bf16.mxu1 %v4074_v10  ;;  %3870 = vmatpush3.bf16.msra.mxu0 %v4089_v11  ;;  %v4110_v10 = vld [vmem:[#allocation11 + $0x160] sm:$0xff]  }
 0x2d3   :  { %3871 = vmatprep.subr.bf16.mxu0 %v4090_v12  ;;  %v2399_v23 = vadd.f32 %v2398_v18, %v1049_v16  ;;  %v2440_v57 = vadd.f32 %v2439_v15, %v2397_v50  ;;  %v4111_v11 = vld [vmem:[#allocation11 + $0x120] sm:$0xff]   ;;  %v4112_v12 = vld [vmem:[#allocation11 + $0x158] sm:$0xff]   ;;  %v4114_v15 = vld [vmem:[#allocation11 + $0x150] sm:$0xff]  }
 0x2d4   :  { %v2400_v24 = vpop.f32.mrf.mxu1  ;;  %v2443_v22 = vpop.f32.mrf.mxu0  ;;  %v4117_v18 = vld [vmem:[#allocation11 + $0x108] sm:$0xff]   ;;  %v4126_v50 = vld [vmem:[#allocation11 + $0x1e0] sm:$0xff]  }
 0x2d5   :  { %3850 = vmatpush3.bf16.msra.mxu1 %v4075_v17  ;;  %v2442_v35 = vadd.f32 %v2441_v19, %v2399_v23  ;;  %v2401_v45 = vadd.f32 %v2400_v24, %v1045_v42  ;;  %v4116_v17 = vld [vmem:[#allocation11 + $0x148] sm:$0xff]   ;;  %v4118_v19 = vld [vmem:[#allocation11 + $0x140] sm:$0xff]  }
 0x2d6   :  { %v2402_v32 = vpop.f32.mrf.mxu1  ;;  %3851 = vmatprep.subr.bf16.mxu1 %v4076_v20  ;;  %3872 = vmatpush3.bf16.msra.mxu0 %v4091_v26  ;;  %v2445_v34 = vpop.f32.mrf.mxu0  ;;  %v4119_v20 = vld [vmem:[#allocation11 + $0x100] sm:$0xff]   ;;  %v1053_v26 = vrot.slane %v4434_v13, %v356_v53 }
 0x2d7   :  { %v2403_v30 = vadd.f32 %v2402_v32, %v1049_v16  ;;  %3873 = vmatprep.subr.bf16.mxu0 %v4092_v21  ;;  %v2444_v52 = vadd.f32 %v2443_v22, %v2401_v45  ;;  %v4115_v16 = vld [vmem:[#allocation11 + $0x110] sm:$0xff]   ;;  %v1057_v22 = vrot.slane %v4434_v13, %v360_v55  ;;  %v4121_v55 = vld [vmem:[#allocation11 + $0x1b8] sm:$0xff]  }
 0x2d9   :  { %v2446_v36 = vadd.f32 %v2445_v34, %v2403_v30  ;;  %3852 = vmatpush3.bf16.msra.mxu1 %v4077_v31  ;;  %v2706_v59 = vpack.c.bf16 %v2444_v52, %v2440_v57  ;;  %v4128_v52 = vld [vmem:[#allocation11 + $0x1d8] sm:$0xff]   ;;  %v4132_v57 = vld [vmem:[#allocation11 + $0x1c8] sm:$0xff]  }
 0x2da   :  { %3853 = vmatprep.subr.bf16.mxu1 %v4078_v29  ;;  %3874 = vmatpush3.bf16.msra.mxu0 %v4093_v25 }
 0x2db   :  { %v2707_v40 = vpack.c.bf16 %v2446_v36, %v2442_v35  ;;  %3875 = vmatprep.subr.bf16.mxu0 %v4094_v33  ;;  %v2714_v0 = vmul.bf16 1045249613, %v2706_v59 }
 0x2dd   :  { %v2715_v43 = vmul.bf16 1045249613, %v2707_v40  ;;  %3854 = vmatpush3.bf16.msra.mxu1 %v4079_v37  ;;  %v2722_v5 = vmax.bf16 %v2714_v0, %v2706_v59  ;;  %v4134_v59 = vld [vmem:[#allocation11 + $0x1c0] sm:$0xff]  }
 0x2de   :  { %3855 = vmatprep.subr.bf16.mxu1 %v4080_v38  ;;  %3876 = vmatpush3.bf16.msra.mxu0 %v4095_v39 }
 0x2df   :  { %v2723_v48 = vmax.bf16 %v2715_v43, %v2707_v40  ;;  %3877 = vmatprep.subr.bf16.mxu0 %v4096_v41 }
 0x2e1   :  { %3856 = vmatpush3.bf16.msra.mxu1 %v4081_v44  ;;  %3281 = vmatprep.mubr.bf16.mxu1 %v2723_v48  ;;  %v4124_v48 = vld [vmem:[#allocation11 + $0x1e8] sm:$0xff]  }
 0x2e2   :  { %3857 = vmatprep.subr.bf16.mxu1 %v4082_v46  ;;  %3878 = vmatpush3.bf16.msra.mxu0 %v4097_v47  ;;  %v4122_v46 = vld [vmem:[#allocation11 + $0x1f0] sm:$0xff]  }
 0x2e3   :  { %3879 = vmatprep.subr.bf16.mxu0 %v4098_v49  ;;  %v4123_v47 = vld [vmem:[#allocation11 + $0x1b0] sm:$0xff]   ;;  %v4125_v49 = vld [vmem:[#allocation11 + $0x1a8] sm:$0xff]  }
 0x2e5   :  { %3858 = vmatpush3.bf16.msra.mxu1 %v4083_v51  ;;  %v4127_v51 = vld [vmem:[#allocation11 + $0x1a0] sm:$0xff]  }
 0x2e6   :  { %3859 = vmatprep.subr.bf16.mxu1 %v4084_v54  ;;  %3880 = vmatpush3.bf16.msra.mxu0 %v4099_v28  ;;  %v4129_v54 = vld [vmem:[#allocation11 + $0x198] sm:$0xff]   ;;  %v4130_v28 = vld [vmem:[#allocation11 + $0x1d0] sm:$0xff]  }
 0x2e7   :  { %3881 = vmatprep.subr.bf16.mxu0 %v4100_v56  ;;  %v4131_v56 = vld [vmem:[#allocation11 + $0x190] sm:$0xff]  }
 0x2e9   :  { %3860 = vmatpush3.bf16.msra.mxu1 %v4085_v58  ;;  %v4133_v58 = vld [vmem:[#allocation11 + $0x188] sm:$0xff]  }
 0x2ea   :  { %3861 = vmatprep.subr.bf16.mxu1 %v4086_v60  ;;  %3882 = vmatpush3.bf16.msra.mxu0 %v4101_v61  ;;  %v4135_v60 = vld [vmem:[#allocation11 + $0x180] sm:$0xff]   ;;  %v1060_v61 = vsub.s32 4, %v4387_v27 }
 0x2eb   :  { %3883 = vmatprep.subr.bf16.mxu0 %v4102_v62  ;;  %v1064_v62 = vsub.s32 5, %v4387_v27 }
 0x2ed   :  { %3862 = vmatpush3.bf16.msra.mxu1 %v4087_v63  ;;  %v1061_v63 = vrot.slane %v4434_v13, %v1060_v61 }
 0x2ee   :  { %3884 = vmatpush3.bf16.msra.mxu0 %v4103_v1  ;;  %3891 = vmatprep.subr.bf16.mxu1 %v4104_v2  ;;  %v1065_v2 = vrot.slane %v4434_v13, %v1064_v62 }
 0x2ef   :  { %3913 = vmatprep.subr.bf16.mxu0 %v4120_v3 }
 0x2f0   :  { %3282 = vmatmul.mubr.bf16.vlgmr.msra.gmra.mxu1 %v2722_v5 }
 0x2f1   :  { %3892 = vmatpush3.bf16.msra.mxu1 %v4105_v4 }
 0x2f2   :  { %3893 = vmatprep.subr.bf16.mxu1 %v4106_v6 }
 0x2f5   :  { %3894 = vmatpush3.bf16.msra.mxu1 %v4107_v7 }
 0x2f6   :  { %3895 = vmatprep.subr.bf16.mxu1 %v4108_v8 }
 0x2f9   :  { %3896 = vmatpush3.bf16.msra.mxu1 %v4109_v9 }
 0x2fa   :  { %3897 = vmatprep.subr.bf16.mxu1 %v4110_v10 }
 0x2fd   :  { %3898 = vmatpush3.bf16.msra.mxu1 %v4111_v11 }
 0x2fe   :  { %3899 = vmatprep.subr.bf16.mxu1 %v4112_v12 }
 0x301   :  { %3900 = vmatpush3.bf16.msra.mxu1 %v4113_v14 }
 0x302   :  { %3901 = vmatprep.subr.bf16.mxu1 %v4114_v15 }
 0x305   :  { %3902 = vmatpush3.bf16.msra.mxu1 %v4115_v16 }
 0x306   :  { %3903 = vmatprep.subr.bf16.mxu1 %v4116_v17 }
 0x309   :  { %3904 = vmatpush3.bf16.msra.mxu1 %v4117_v18 }
 0x30a   :  { %3905 = vmatprep.subr.bf16.mxu1 %v4118_v19 }
 0x30d   :  { %3906 = vmatpush3.bf16.msra.mxu1 %v4119_v20 }
 0x310   :  { %v2482_v21 = vpop.f32.mrf.mxu1  ;;  %v2525_v24 = vpop.f32.mrf.mxu0 }
 0x311   :  { %v2483_v32 = vadd.f32 %v2482_v21, %v1053_v26 }
 0x312   :  { %v2484_v23 = vpop.f32.mrf.mxu1  ;;  %v2527_v31 = vpop.f32.mrf.mxu0 }
 0x313   :  { %v2485_v30 = vadd.f32 %v2484_v23, %v1057_v22  ;;  %v2526_v35 = vadd.f32 %v2525_v24, %v2483_v32  ;;  %v1072_v23 = vsub.s32 7, %v4387_v27 }
 0x314   :  { %v2486_v29 = vpop.f32.mrf.mxu1  ;;  %v2529_v25 = vpop.f32.mrf.mxu0 }
 0x315   :  { %v2487_v33 = vadd.f32 %v2486_v29, %v1053_v26  ;;  %v2528_v39 = vadd.f32 %v2527_v31, %v2485_v30 }
 0x316   :  { %v2488_v34 = vpop.f32.mrf.mxu1  ;;  %v2531_v38 = vpop.f32.mrf.mxu0 }
 0x317   :  { %v2530_v36 = vadd.f32 %v2529_v25, %v2487_v33  ;;  %v2489_v37 = vadd.f32 %v2488_v34, %v1057_v22  ;;  %v1068_v22 = vsub.s32 6, %v4387_v27  ;;  %v1073_v25 = vrot.slane %v4434_v13, %v1072_v23 }
 0x319   :  { %v2708_v53 = vpack.c.bf16 %v2530_v36, %v2526_v35  ;;  %v2532_v40 = vadd.f32 %v2531_v38, %v2489_v37  ;;  %v1069_v31 = vrot.slane %v4434_v13, %v1068_v22 }
 0x31b   :  { %v2709_v41 = vpack.c.bf16 %v2532_v40, %v2528_v39  ;;  %v2716_v42 = vmul.bf16 1045249613, %v2708_v53 }
 0x31d   :  { %v2717_v43 = vmul.bf16 1045249613, %v2709_v41  ;;  %v2724_v45 = vmax.bf16 %v2716_v42, %v2708_v53 }
 0x31f   :  { %v2725_v44 = vmax.bf16 %v2717_v43, %v2709_v41 }
 0x321   :  { %3322 = vmatprep.mubr.bf16.mxu0 %v2725_v44 }
 0x322   :  { %3323 = vmatmul.mubr.bf16.vlgmr.msra.gmra.mxu0 %v2724_v45 }
 0x323   :  { %3914 = vmatpush3.bf16.msra.mxu0 %v4121_v55 }
 0x324   :  { %3915 = vmatprep.subr.bf16.mxu0 %v4122_v46 }
 0x327   :  { %3916 = vmatpush3.bf16.msra.mxu0 %v4123_v47 }
 0x328   :  { %3917 = vmatprep.subr.bf16.mxu0 %v4124_v48 }
 0x32b   :  { %3918 = vmatpush3.bf16.msra.mxu0 %v4125_v49 }
 0x32c   :  { %3919 = vmatprep.subr.bf16.mxu0 %v4126_v50 }
 0x32f   :  { %3920 = vmatpush3.bf16.msra.mxu0 %v4127_v51 }
 0x330   :  { %3921 = vmatprep.subr.bf16.mxu0 %v4128_v52 }
 0x333   :  { %3922 = vmatpush3.bf16.msra.mxu0 %v4129_v54 }
 0x334   :  { %3923 = vmatprep.subr.bf16.mxu0 %v4130_v28 }
 0x337   :  { %3924 = vmatpush3.bf16.msra.mxu0 %v4131_v56 }
 0x338   :  { %3925 = vmatprep.subr.bf16.mxu0 %v4132_v57 }
 0x33b   :  { %3926 = vmatpush3.bf16.msra.mxu0 %v4133_v58 }
 0x33c   :  { %3927 = vmatprep.subr.bf16.mxu0 %v4134_v59  ;;  %v3782_v59 = vld [vmem:[%s4472_s8] ss:$0 sm:$0xff]  ;;  %s4309_s8 = smov [#allocation13]  }
 0x33d   :  { %s3430_s25 = sshll.u32 %s4309_s8, 4  ;;  %s3431_s25 = int_to_ptr.vmem [resolvable:$true] %s3430_s25 }
 0x33e   :  { %s4264_s26 = scalar_lea.vmem %s3431_s25, 256  ;;  %p4269_p3 = scmp.lt.s32.totalorder %s3431_s25, %s3431_s25 }
 0x33f   :  { %3928 = vmatpush3.bf16.msra.mxu0 %v4135_v60  ;;  %p4265_p2 = scmp.ne.s32.totalorder %s3431_s25, %s4264_s26  ;;  %p4270_p4 = scmp.lt.s32.totalorder %s4264_s26, %s4264_s26 }
 0x341   :  { %p4271_p5 = por %p4270_p4, %p4269_p3 }
 0x343   :  { %p4272_p6 = pnand %p4271_p5, %p4265_p2 }
 0x350   :  { %v2568_v0 = vpop.f32.mrf.mxu1 }
 0x351   :  { %v2611_v1 = vpop.f32.mrf.mxu0  ;;  %v2569_v4 = vadd.f32 %v2568_v0, %v1061_v63 }
 0x352   :  { %v2570_v3 = vpop.f32.mrf.mxu1 }
 0x353   :  { %v2613_v5 = vpop.f32.mrf.mxu0  ;;  %v2571_v7 = vadd.f32 %v2570_v3, %v1065_v2  ;;  %v2612_v11 = vadd.f32 %v2611_v1, %v2569_v4 }
 0x354   :  { %v2572_v6 = vpop.f32.mrf.mxu1 }
 0x355   :  { %v2573_v8 = vadd.f32 %v2572_v6, %v1061_v63  ;;  %v2615_v9 = vpop.f32.mrf.mxu0  ;;  %v2614_v16 = vadd.f32 %v2613_v5, %v2571_v7 }
 0x356   :  { %v2574_v10 = vpop.f32.mrf.mxu1 }
 0x357   :  { %v2616_v12 = vadd.f32 %v2615_v9, %v2573_v8  ;;  %v2575_v14 = vadd.f32 %v2574_v10, %v1065_v2  ;;  %v2617_v15 = vpop.f32.mrf.mxu0 }
 0x359   :  { %v2710_v17 = vpack.c.bf16 %v2616_v12, %v2612_v11  ;;  %v2618_v18 = vadd.f32 %v2617_v15, %v2575_v14 }
 0x35b   :  { %v2711_v19 = vpack.c.bf16 %v2618_v18, %v2614_v16  ;;  %v2718_v20 = vmul.bf16 1045249613, %v2710_v17 }
 0x35d   :  { %v2719_v26 = vmul.bf16 1045249613, %v2711_v19  ;;  %v2726_v24 = vmax.bf16 %v2718_v20, %v2710_v17 }
 0x35f   :  { %v2727_v21 = vmax.bf16 %v2719_v26, %v2711_v19 }
 0x361   :  { %3363 = vmatprep.mubr.bf16.mxu1 %v2727_v21 }
 0x362   :  { %3364 = vmatmul.mubr.bf16.vlgmr.msra.gmra.mxu1 %v2726_v24 }
 0x390   :  { %v2654_v32 = vpop.f32.mrf.mxu1 }
 0x391   :  { %v2697_v29 = vpop.f32.mrf.mxu0  ;;  %v2655_v33 = vadd.f32 %v2654_v32, %v1069_v31 }
 0x392   :  { %v2656_v30 = vpop.f32.mrf.mxu1 }
 0x393   :  { %v2699_v34 = vpop.f32.mrf.mxu0  ;;  %v2657_v36 = vadd.f32 %v2656_v30, %v1073_v25  ;;  %v2698_v53 = vadd.f32 %v2697_v29, %v2655_v33 }
 0x394   :  { %v2658_v35 = vpop.f32.mrf.mxu1 }
 0x395   :  { %v2659_v37 = vadd.f32 %v2658_v35, %v1069_v31  ;;  %v2701_v38 = vpop.f32.mrf.mxu0  ;;  %v2700_v43 = vadd.f32 %v2699_v34, %v2657_v36 }
 0x396   :  { %v2660_v39 = vpop.f32.mrf.mxu1 }
 0x397   :  { %v2702_v40 = vadd.f32 %v2701_v38, %v2659_v37  ;;  %v2661_v41 = vadd.f32 %v2660_v39, %v1073_v25  ;;  %v2703_v42 = vpop.f32.mrf.mxu0 }
 0x399   :  { %v2712_v27 = vpack.c.bf16 %v2702_v40, %v2698_v53  ;;  %v2704_v44 = vadd.f32 %v2703_v42, %v2661_v41 }
 0x39b   :  { %v2713_v55 = vpack.c.bf16 %v2704_v44, %v2700_v43  ;;  %v2720_v45 = vmul.bf16 1045249613, %v2712_v27 }
 0x39d   :  { %v2721_v46 = vmul.bf16 1045249613, %v2713_v55  ;;  %v2728_v13 = vmax.bf16 %v2720_v45, %v2712_v27 }
 0x39f   :  { %v2729_v47 = vmax.bf16 %v2721_v46, %v2713_v55 }
 0x3a1   :  { %3404 = vmatprep.mubr.bf16.mxu0 %v2729_v47 }
 0x3a2   :  { %3405 = vmatmul.mubr.bf16.vlgmr.msra.gmra.mxu0 %v2728_v13 }
 0x3b0   :  { %v3863_v48 = vpop.f32.mrf.mxu1 }
 0x3b2   :  { %v3864_v49 = vpop.f32.mrf.mxu1 }
 0x3b3   :  { %v3865_v58 = vadd.f32 %v3864_v49, %v3863_v48 }
 0x3b4   :  { %v3866_v50 = vpop.f32.mrf.mxu1 }
 0x3b5   :  { %v3284_v63 = vadd.f32 %v3865_v58, %v3782_v59 }
 0x3b6   :  { %v3867_v51 = vpop.f32.mrf.mxu1 }
 0x3b7   :  { %v3868_v0 = vadd.f32 %v3867_v51, %v3866_v50 }
 0x3b9   :  { %v3287_v7 = vadd.f32 %v3868_v0, %v3782_v59 }
 0x3e2   :  { %v3885_v52 = vpop.f32.mrf.mxu0 }
 0x3e4   :  { %v3886_v28 = vpop.f32.mrf.mxu0 }
 0x3e5   :  { %v3887_v61 = vadd.f32 %v3886_v28, %v3885_v52 }
 0x3e6   :  { %v3888_v57 = vpop.f32.mrf.mxu0 }
 0x3e7   :  { %v3325_v4 = vadd.f32 %v3887_v61, %v3284_v63 }
 0x3e8   :  { %v3889_v62 = vpop.f32.mrf.mxu0 }
 0x3e9   :  { %v3890_v5 = vadd.f32 %v3889_v62, %v3888_v57 }
 0x3eb   :  { %v3328_v12 = vadd.f32 %v3890_v5, %v3287_v7 }
 0x422   :  { %v3907_v54 = vpop.f32.mrf.mxu1 }
 0x424   :  { %v3908_v56 = vpop.f32.mrf.mxu1 }
 0x425   :  { %v3909_v1 = vadd.f32 %v3908_v56, %v3907_v54 }
 0x426   :  { %v3910_v60 = vpop.f32.mrf.mxu1 }
 0x427   :  { %v3366_v8 = vadd.f32 %v3909_v1, %v3325_v4 }
 0x428   :  { %v3911_v2 = vpop.f32.mrf.mxu1 }
 0x429   :  { %v3912_v9 = vadd.f32 %v3911_v2, %v3910_v60 }
 0x42b   :  { %v3369_v16 = vadd.f32 %v3912_v9, %v3328_v12 }
 0x462   :  { %v3929_v3 = vpop.f32.mrf.mxu0 }
 0x464   :  { %v3930_v6 = vpop.f32.mrf.mxu0 }
 0x465   :  { %v3931_v10 = vadd.f32 %v3930_v6, %v3929_v3 }
 0x466   :  { %v3932_v11 = vpop.f32.mrf.mxu0 }
 0x467   :  { %v3407_v14 = vadd.f32 %v3931_v10, %v3366_v8 }
 0x468   :  { %v3933_v15 = vpop.f32.mrf.mxu0 }
 0x469   :  { %v3413_v17 = vsub.f32 0.0, %v3407_v14  ;;  %v3934_v18 = vadd.f32 %v3933_v15, %v3932_v11 }
 0x46b   :  { %v3415_v19 = vmul.f32 1.442695, %v3413_v17  ;;  %v3410_v20 = vadd.f32 %v3934_v18, %v3369_v16 }
 0x46d   :  { %4136 = vpow2.f32 %v3415_v19  ;;  %v3414_v26 = vsub.f32 0.0, %v3410_v20 }
 0x46f   :  { %v3417_v21 = vmul.f32 1.442695, %v3414_v26 }
 0x471   :  { %4138 = vpow2.f32 %v3417_v21 }
 0x47a   :  { %v4137_v24 = vpop.eup %4136 }
 0x47b   :  { %v3419_v22 = vadd.f32 1.0, %v4137_v24 }
 0x47d   :  { %4140 = vrcp.f32 %v3419_v22 }
 0x47e   :  { %v4139_v23 = vpop.eup %4138 }
 0x47f   :  { %v3420_v31 = vadd.f32 1.0, %v4139_v23 }
 0x481   :  { %4142 = vrcp.f32 %v3420_v31 }
 0x48a   :  { %v4141_v32 = vpop.eup %4140 }
 0x48b   :  { %3423 = vst [vmem:[#allocation13] sm:$0xff] %v4141_v32 }
 0x48e   :  { %v4143_v29 = vpop.eup %4142 }
 0x48f   :  { %3424 = vst [vmem:[#allocation13 + $0x8] sm:$0xff] %v4143_v29 }
 0x490   :  { %4275 = shalt.err (!%p4272_p6)
}
 0x491   :  { %3436 = dma.vmem_to_hbm [thread:$0]  %s3431_s25, 256, %s4473_s9, [#allocation4], %s4295_s12, %s4295_s12, %s4296_s13  }
 0x492   :  { %4292 = dma.done.wait [#allocation4], 256  }
 0x493   :  { %4293 = vsyncadd [#allocation4], 4294967040 }
 0x494   :  { %3440 = vsyncpa [#allocation3], 1 }
 0x495   :  { %3441 = vsyncpa [#allocation6], 1 }
 0x496   :  { %3442 = vsyncpa [#allocation9], 1 }
 0x497   :  { %3443 = vsyncpa [#allocation12], 1 }
 0x498   :  { %3444 = vsyncpa [#allocation4], 1 }

</bundles_post_ra>
